<compile_context>
chip_gen: v7x
topology: tpu7x:2x2x1
jax: 0.10.0
libtpu: 0.0.40
codegen_flags: <defaults>
</compile_context>

<pallas_src>
import functools

import jax
import jax.numpy as jnp
import numpy as np
from jax.experimental import pallas as pl
from jax.experimental.pallas import tpu as pltpu


def _cross_mse_kernel(x_ref, t_ref, out_ref, *, p, d, tns, n_valid, need_mask):
    """One grid step: tns * 128 independent (b, s) slabs.

    x_ref:   (p*(d+1), tns, 128)  channel c = i*(d+1)+k ; k == d is confidence
    t_ref:   (p*d,     tns, 128)  channel c = j*d+k
    out_ref: (tns, 128)           per-slab loss (padded slabs write 0)
    """
    dp1 = d + 1
    block_row0 = pl.program_id(0) * tns

    def group(s0):
        # One 8-sublane (one f32 vreg row-group) slice: 8*128 = 1024 slabs.
        sl = pl.ds(s0, 8)

        # conf^2 per prediction and the term-2 weight (1 / conf^2)^2.
        # Reciprocal on the EUP slot + one Newton step (error ~ eps^2).
        conf2 = []
        w2 = []
        for i in range(p):
            c = x_ref[i * dp1 + d, sl, :]
            c2 = c * c
            r = pl.reciprocal(c2, approx=True)
            r = r * (2.0 - c2 * r)          # Newton refinement
            conf2.append(c2)
            w2.append(r * r)

        min_sq_obj = [None] * p    # min_j ||pred_i - tgt_j||^2
        min_wsq_pred = [None] * p  # min_i ||pred_i - tgt_j||^2 / conf2_i^2

        for i in range(p):
            pred_i = [x_ref[i * dp1 + k, sl, :] for k in range(d)]
            for j in range(p):
                diff = pred_i[0] - t_ref[j * d, sl, :]
                sq = diff * diff
                for k in range(1, d):
                    diff = pred_i[k] - t_ref[j * d + k, sl, :]
                    sq = sq + diff * diff
                if min_sq_obj[i] is None:
                    min_sq_obj[i] = sq
                else:
                    min_sq_obj[i] = jnp.minimum(min_sq_obj[i], sq)
                wsq = sq * w2[i]
                if min_wsq_pred[j] is None:
                    min_wsq_pred[j] = wsq
                else:
                    min_wsq_pred[j] = jnp.minimum(min_wsq_pred[j], wsq)

        # sqrt only of the 2*p winners (sqrt is monotonic, weights > 0).
        loss = conf2[0] * jnp.sqrt(min_sq_obj[0])
        for i in range(1, p):
            loss = loss + conf2[i] * jnp.sqrt(min_sq_obj[i])
        for j in range(p):
            loss = loss + jnp.sqrt(min_wsq_pred[j])

        if need_mask:
            # Zero the padded tail (padded slabs are all-zero -> their math
            # produces inf/NaN lanes, so mask BEFORE the store).
            base = (block_row0 + s0) * 128
            ids = (base
                   + jax.lax.broadcasted_iota(jnp.int32, (8, 128), 0) * 128
                   + jax.lax.broadcasted_iota(jnp.int32, (8, 128), 1))
            loss = jnp.where(ids < n_valid, loss, 0.0)

        out_ref[sl, :] = loss

    num_groups = tns // 8
    if num_groups == 1:
        group(0)
    else:
        # Rolled loop, manually unrolled 2x (plain fori_loop only — robust
        # lowering, bounded instruction stream and register pressure).
        pairs = num_groups // 2

        def body(g, carry):
            s0 = pl.multiple_of(g * 16, 16)
            group(s0)
            group(pl.multiple_of(s0 + 8, 8))
            return carry

        jax.lax.fori_loop(0, pairs, body, 0)
        if num_groups % 2:
            group((num_groups - 1) * 8)


def _tpu_vmem_capacity_bytes(default=64 * 1024 * 1024):
    try:
        return int(pltpu.get_tpu_info().vmem_capacity_bytes)
    except Exception:
        return default


def cross_mse_loss(inputs, targets, *, block_sublanes=256):
    """Pallas implementation of crossMSEloss.forward.

    inputs:  (B, S, P, latent+1)  last channel is the confidence
    targets: (B, S, P, latent)
    """
    b, s, p, dp1 = inputs.shape
    d = dp1 - 1
    assert targets.shape == (b, s, p, d)

    n = b * s
    x = inputs.reshape(n, p * dp1)
    t = targets.reshape(n, p * d)
    if x.dtype != jnp.float32:
        x = x.astype(jnp.float32)
    if t.dtype != jnp.float32:
        t = t.astype(jnp.float32)

    c_in = p * dp1
    c_tg = p * d

    # ---- block-size selection --------------------------------------------
    nb = -(-n // 128)                       # number of 128-slab lane groups
    # v7x has only 64 MiB physical VMEM -> cap the tile at 384 sublanes;
    # allow up to 512 only on >=128 MiB parts (v5e/v6e) if the caller asks.
    vmem_cap = _tpu_vmem_capacity_bytes()
    max_sublanes = 512 if vmem_cap >= 100 * 1024 * 1024 else 384
    cap = max(8, (int(min(block_sublanes, max_sublanes)) // 8) * 8)
    # Aim for >= ~4 grid steps so the "parallel" axis feeds both TensorCores
    # on v7x and load-balances, without exceeding the VMEM-derived cap.
    target = max(8, ((-(-nb // 4) + 7) // 8) * 8)
    tns = min(cap, target)
    nb_pad = ((nb + tns - 1) // tns) * tns
    n_pad = nb_pad * 128
    grid_g = nb_pad // tns
    pad = n_pad - n

    # ---- staging: single (fused) transpose per tensor, zero padding --------
    xc = x.T                                # (c_in, n)
    tc = t.T                                # (c_tg, n)
    if pad:
        xc = jnp.pad(xc, ((0, 0), (0, pad)))
        tc = jnp.pad(tc, ((0, 0), (0, pad)))
    xc = xc.reshape(c_in, nb_pad, 128)      # channel-major, slab-dense layout
    tc = tc.reshape(c_tg, nb_pad, 128)

    kernel = functools.partial(_cross_mse_kernel, p=p, d=d, tns=tns,
                               n_valid=n, need_mask=bool(pad))

    # Double-buffered inputs + output, with ~25% headroom; always >= 32 MiB
    # (v5e's default scoped limit is only 16 MiB), never above physical.
    block_bytes = (c_in + c_tg + 1) * tns * 128 * 4
    vmem_limit = int(max(32 * 1024 * 1024,
                         min(vmem_cap - 8 * 1024 * 1024,
                             2 * block_bytes * 5 // 4)))

    cost = pl.CostEstimate(
        flops=int(n_pad) * (p * p * (3 * d + 4) + 8 * p),
        transcendentals=int(n_pad) * 3 * p,          # 2p sqrt + p reciprocal
        bytes_accessed=int(n_pad) * (c_in + c_tg + 1) * 4,
    )

    per_slab = pl.pallas_call(
        kernel,
        out_shape=jax.ShapeDtypeStruct((nb_pad, 128), jnp.float32),
        grid_spec=pltpu.PrefetchScalarGridSpec(
            num_scalar_prefetch=0,
            grid=(grid_g,),
            in_specs=[
                pl.BlockSpec((c_in, tns, 128), lambda i: (0, i, 0)),
                pl.BlockSpec((c_tg, tns, 128), lambda i: (0, i, 0)),
            ],
            out_specs=pl.BlockSpec((tns, 128), lambda i: (i, 0)),
        ),
        compiler_params=pltpu.CompilerParams(
            dimension_semantics=("parallel",),
            vmem_limit_bytes=vmem_limit,
        ),
        cost_estimate=cost,
    )(xc, tc)

    # Final mean over the real (non-padded) slabs; padded slabs contribute 0.
    return jnp.sum(per_slab) / jnp.float32(n)


def cross_mse_loss_ref(inputs, targets):
    """Plain-JAX reference mirroring the PyTorch module exactly."""
    conf = inputs[..., -1] ** 2
    preds = inputs[..., :-1]
    l2 = jnp.linalg.norm(
        preds[:, :, :, None, :] - targets[:, :, None, :, :], axis=-1)
    loss = (jnp.sum(conf * jnp.min(l2, axis=-1), axis=-1)
            + jnp.sum(jnp.min(l2 / conf[..., None], axis=2), axis=-1))
    return loss.mean()


def _make_inputs(key, B, S, P, LATENT):
    k_in, k_tgt = jax.random.split(key)
    inputs = jax.random.normal(k_in, (B, S, P, LATENT + 1), dtype=jnp.float32)
    # Keep the confidence channel bounded away from zero so 1/conf**2 is tame.
    inputs = inputs.at[..., -1].set(jnp.abs(inputs[..., -1]) + 0.5)
    targets = jax.random.normal(k_tgt, (B, S, P, LATENT), dtype=jnp.float32)
    return inputs, targets


if __name__ == "__main__":
    key = jax.random.PRNGKey(0)
    k0, k1 = jax.random.split(key)

    # Small shape from the module spec: inputs (2, 8, 4, 9), targets (2, 8, 4, 8).
    B, S, P, LATENT = 2, 8, 4, 8
    inputs, targets = _make_inputs(k0, B, S, P, LATENT)
    loss = jax.block_until_ready(cross_mse_loss(inputs, targets))
    loss_ref = jax.block_until_ready(cross_mse_loss_ref(inputs, targets))
    np.testing.assert_allclose(np.asarray(loss), np.asarray(loss_ref),
                               rtol=1e-4, atol=1e-5)

    # A slightly larger case that exercises the rolled sublane loop,
    # multi-block grid, and the in-kernel tail mask.
    B2, S2 = 8, 520
    inputs2, targets2 = _make_inputs(k1, B2, S2, P, LATENT)
    loss2 = jax.block_until_ready(cross_mse_loss(inputs2, targets2))
    loss2_ref = jax.block_until_ready(cross_mse_loss_ref(inputs2, targets2))
    np.testing.assert_allclose(np.asarray(loss2), np.asarray(loss2_ref),
                               rtol=2e-4, atol=1e-5)

    print("KERNEL_OK")
</pallas_src>

<mosaic_0001>
module attributes {stable_mosaic.version = 11 : i64} {
  func.func @_cross_mse_kernel(%arg0: i32, %arg1: memref<36x8x128xf32, #tpu.memory_space<vmem>>, %arg2: memref<32x8x128xf32, #tpu.memory_space<vmem>>, %arg3: memref<8x128xf32, #tpu.memory_space<vmem>>) attributes {dimension_semantics = [#tpu.dimension_semantics<parallel>], iteration_bounds = array<i64: 1>, scalar_prefetch = 0 : i64, scratch_operands = 0 : i64, tpu.core_type = #tpu.core_type<tc>, window_params = [{transform_indices = @transform_0, window_bounds = array<i64: 36, 8, 128>}, {transform_indices = @transform_1, window_bounds = array<i64: 32, 8, 128>}, {transform_indices = @transform_2, window_bounds = array<i64: 8, 128>}]} {
    %c8_i32 = arith.constant 8 : i32
    %0 = arith.muli %arg0, %c8_i32 : i32
    %c8 = arith.constant 8 : index
    %c0 = arith.constant 0 : index
    %c0_0 = arith.constant 0 : index
    %1 = vector.load %arg1[%c8, %c0, %c0_0] : memref<36x8x128xf32, #tpu.memory_space<vmem>>, vector<1x8x128xf32>
    %2 = vector.shape_cast %1 : vector<1x8x128xf32> to vector<8x128xf32>
    %3 = arith.mulf %2, %2 : vector<8x128xf32>
    %4 = tpu.reciprocal %3 {approx = true} : vector<8x128xf32> -> vector<8x128xf32>
    %5 = arith.mulf %3, %4 : vector<8x128xf32>
    %cst = arith.constant 2.000000e+00 : f32
    %6 = vector.broadcast %cst : f32 to vector<8x128xf32>
    %7 = arith.subf %6, %5 : vector<8x128xf32>
    %8 = arith.mulf %4, %7 : vector<8x128xf32>
    %9 = arith.mulf %8, %8 : vector<8x128xf32>
    %c17 = arith.constant 17 : index
    %c0_1 = arith.constant 0 : index
    %c0_2 = arith.constant 0 : index
    %10 = vector.load %arg1[%c17, %c0_1, %c0_2] : memref<36x8x128xf32, #tpu.memory_space<vmem>>, vector<1x8x128xf32>
    %11 = vector.shape_cast %10 : vector<1x8x128xf32> to vector<8x128xf32>
    %12 = arith.mulf %11, %11 : vector<8x128xf32>
    %13 = tpu.reciprocal %12 {approx = true} : vector<8x128xf32> -> vector<8x128xf32>
    %14 = arith.mulf %12, %13 : vector<8x128xf32>
    %cst_3 = arith.constant 2.000000e+00 : f32
    %15 = vector.broadcast %cst_3 : f32 to vector<8x128xf32>
    %16 = arith.subf %15, %14 : vector<8x128xf32>
    %17 = arith.mulf %13, %16 : vector<8x128xf32>
    %18 = arith.mulf %17, %17 : vector<8x128xf32>
    %c26 = arith.constant 26 : index
    %c0_4 = arith.constant 0 : index
    %c0_5 = arith.constant 0 : index
    %19 = vector.load %arg1[%c26, %c0_4, %c0_5] : memref<36x8x128xf32, #tpu.memory_space<vmem>>, vector<1x8x128xf32>
    %20 = vector.shape_cast %19 : vector<1x8x128xf32> to vector<8x128xf32>
    %21 = arith.mulf %20, %20 : vector<8x128xf32>
    %22 = tpu.reciprocal %21 {approx = true} : vector<8x128xf32> -> vector<8x128xf32>
    %23 = arith.mulf %21, %22 : vector<8x128xf32>
    %cst_6 = arith.constant 2.000000e+00 : f32
    %24 = vector.broadcast %cst_6 : f32 to vector<8x128xf32>
    %25 = arith.subf %24, %23 : vector<8x128xf32>
    %26 = arith.mulf %22, %25 : vector<8x128xf32>
    %27 = arith.mulf %26, %26 : vector<8x128xf32>
    %c35 = arith.constant 35 : index
    %c0_7 = arith.constant 0 : index
    %c0_8 = arith.constant 0 : index
    %28 = vector.load %arg1[%c35, %c0_7, %c0_8] : memref<36x8x128xf32, #tpu.memory_space<vmem>>, vector<1x8x128xf32>
    %29 = vector.shape_cast %28 : vector<1x8x128xf32> to vector<8x128xf32>
    %30 = arith.mulf %29, %29 : vector<8x128xf32>
    %31 = tpu.reciprocal %30 {approx = true} : vector<8x128xf32> -> vector<8x128xf32>
    %32 = arith.mulf %30, %31 : vector<8x128xf32>
    %cst_9 = arith.constant 2.000000e+00 : f32
    %33 = vector.broadcast %cst_9 : f32 to vector<8x128xf32>
    %34 = arith.subf %33, %32 : vector<8x128xf32>
    %35 = arith.mulf %31, %34 : vector<8x128xf32>
    %36 = arith.mulf %35, %35 : vector<8x128xf32>
    %c0_10 = arith.constant 0 : index
    %c0_11 = arith.constant 0 : index
    %c0_12 = arith.constant 0 : index
    %37 = vector.load %arg1[%c0_10, %c0_11, %c0_12] : memref<36x8x128xf32, #tpu.memory_space<vmem>>, vector<1x8x128xf32>
    %38 = vector.shape_cast %37 : vector<1x8x128xf32> to vector<8x128xf32>
    %c1 = arith.constant 1 : index
    %c0_13 = arith.constant 0 : index
    %c0_14 = arith.constant 0 : index
    %39 = vector.load %arg1[%c1, %c0_13, %c0_14] : memref<36x8x128xf32, #tpu.memory_space<vmem>>, vector<1x8x128xf32>
    %40 = vector.shape_cast %39 : vector<1x8x128xf32> to vector<8x128xf32>
    %c2 = arith.constant 2 : index
    %c0_15 = arith.constant 0 : index
    %c0_16 = arith.constant 0 : index
    %41 = vector.load %arg1[%c2, %c0_15, %c0_16] : memref<36x8x128xf32, #tpu.memory_space<vmem>>, vector<1x8x128xf32>
    %42 = vector.shape_cast %41 : vector<1x8x128xf32> to vector<8x128xf32>
    %c3 = arith.constant 3 : index
    %c0_17 = arith.constant 0 : index
    %c0_18 = arith.constant 0 : index
    %43 = vector.load %arg1[%c3, %c0_17, %c0_18] : memref<36x8x128xf32, #tpu.memory_space<vmem>>, vector<1x8x128xf32>
    %44 = vector.shape_cast %43 : vector<1x8x128xf32> to vector<8x128xf32>
    %c4 = arith.constant 4 : index
    %c0_19 = arith.constant 0 : index
    %c0_20 = arith.constant 0 : index
    %45 = vector.load %arg1[%c4, %c0_19, %c0_20] : memref<36x8x128xf32, #tpu.memory_space<vmem>>, vector<1x8x128xf32>
    %46 = vector.shape_cast %45 : vector<1x8x128xf32> to vector<8x128xf32>
    %c5 = arith.constant 5 : index
    %c0_21 = arith.constant 0 : index
    %c0_22 = arith.constant 0 : index
    %47 = vector.load %arg1[%c5, %c0_21, %c0_22] : memref<36x8x128xf32, #tpu.memory_space<vmem>>, vector<1x8x128xf32>
    %48 = vector.shape_cast %47 : vector<1x8x128xf32> to vector<8x128xf32>
    %c6 = arith.constant 6 : index
    %c0_23 = arith.constant 0 : index
    %c0_24 = arith.constant 0 : index
    %49 = vector.load %arg1[%c6, %c0_23, %c0_24] : memref<36x8x128xf32, #tpu.memory_space<vmem>>, vector<1x8x128xf32>
    %50 = vector.shape_cast %49 : vector<1x8x128xf32> to vector<8x128xf32>
    %c7 = arith.constant 7 : index
    %c0_25 = arith.constant 0 : index
    %c0_26 = arith.constant 0 : index
    %51 = vector.load %arg1[%c7, %c0_25, %c0_26] : memref<36x8x128xf32, #tpu.memory_space<vmem>>, vector<1x8x128xf32>
    %52 = vector.shape_cast %51 : vector<1x8x128xf32> to vector<8x128xf32>
    %c0_27 = arith.constant 0 : index
    %c0_28 = arith.constant 0 : index
    %c0_29 = arith.constant 0 : index
    %53 = vector.load %arg2[%c0_27, %c0_28, %c0_29] : memref<32x8x128xf32, #tpu.memory_space<vmem>>, vector<1x8x128xf32>
    %54 = vector.shape_cast %53 : vector<1x8x128xf32> to vector<8x128xf32>
    %55 = arith.subf %38, %54 : vector<8x128xf32>
    %56 = arith.mulf %55, %55 : vector<8x128xf32>
    %c1_30 = arith.constant 1 : index
    %c0_31 = arith.constant 0 : index
    %c0_32 = arith.constant 0 : index
    %57 = vector.load %arg2[%c1_30, %c0_31, %c0_32] : memref<32x8x128xf32, #tpu.memory_space<vmem>>, vector<1x8x128xf32>
    %58 = vector.shape_cast %57 : vector<1x8x128xf32> to vector<8x128xf32>
    %59 = arith.subf %40, %58 : vector<8x128xf32>
    %60 = arith.mulf %59, %59 : vector<8x128xf32>
    %61 = arith.addf %56, %60 : vector<8x128xf32>
    %c2_33 = arith.constant 2 : index
    %c0_34 = arith.constant 0 : index
    %c0_35 = arith.constant 0 : index
    %62 = vector.load %arg2[%c2_33, %c0_34, %c0_35] : memref<32x8x128xf32, #tpu.memory_space<vmem>>, vector<1x8x128xf32>
    %63 = vector.shape_cast %62 : vector<1x8x128xf32> to vector<8x128xf32>
    %64 = arith.subf %42, %63 : vector<8x128xf32>
    %65 = arith.mulf %64, %64 : vector<8x128xf32>
    %66 = arith.addf %61, %65 : vector<8x128xf32>
    %c3_36 = arith.constant 3 : index
    %c0_37 = arith.constant 0 : index
    %c0_38 = arith.constant 0 : index
    %67 = vector.load %arg2[%c3_36, %c0_37, %c0_38] : memref<32x8x128xf32, #tpu.memory_space<vmem>>, vector<1x8x128xf32>
    %68 = vector.shape_cast %67 : vector<1x8x128xf32> to vector<8x128xf32>
    %69 = arith.subf %44, %68 : vector<8x128xf32>
    %70 = arith.mulf %69, %69 : vector<8x128xf32>
    %71 = arith.addf %66, %70 : vector<8x128xf32>
    %c4_39 = arith.constant 4 : index
    %c0_40 = arith.constant 0 : index
    %c0_41 = arith.constant 0 : index
    %72 = vector.load %arg2[%c4_39, %c0_40, %c0_41] : memref<32x8x128xf32, #tpu.memory_space<vmem>>, vector<1x8x128xf32>
    %73 = vector.shape_cast %72 : vector<1x8x128xf32> to vector<8x128xf32>
    %74 = arith.subf %46, %73 : vector<8x128xf32>
    %75 = arith.mulf %74, %74 : vector<8x128xf32>
    %76 = arith.addf %71, %75 : vector<8x128xf32>
    %c5_42 = arith.constant 5 : index
    %c0_43 = arith.constant 0 : index
    %c0_44 = arith.constant 0 : index
    %77 = vector.load %arg2[%c5_42, %c0_43, %c0_44] : memref<32x8x128xf32, #tpu.memory_space<vmem>>, vector<1x8x128xf32>
    %78 = vector.shape_cast %77 : vector<1x8x128xf32> to vector<8x128xf32>
    %79 = arith.subf %48, %78 : vector<8x128xf32>
    %80 = arith.mulf %79, %79 : vector<8x128xf32>
    %81 = arith.addf %76, %80 : vector<8x128xf32>
    %c6_45 = arith.constant 6 : index
    %c0_46 = arith.constant 0 : index
    %c0_47 = arith.constant 0 : index
    %82 = vector.load %arg2[%c6_45, %c0_46, %c0_47] : memref<32x8x128xf32, #tpu.memory_space<vmem>>, vector<1x8x128xf32>
    %83 = vector.shape_cast %82 : vector<1x8x128xf32> to vector<8x128xf32>
    %84 = arith.subf %50, %83 : vector<8x128xf32>
    %85 = arith.mulf %84, %84 : vector<8x128xf32>
    %86 = arith.addf %81, %85 : vector<8x128xf32>
    %c7_48 = arith.constant 7 : index
    %c0_49 = arith.constant 0 : index
    %c0_50 = arith.constant 0 : index
    %87 = vector.load %arg2[%c7_48, %c0_49, %c0_50] : memref<32x8x128xf32, #tpu.memory_space<vmem>>, vector<1x8x128xf32>
    %88 = vector.shape_cast %87 : vector<1x8x128xf32> to vector<8x128xf32>
    %89 = arith.subf %52, %88 : vector<8x128xf32>
    %90 = arith.mulf %89, %89 : vector<8x128xf32>
    %91 = arith.addf %86, %90 : vector<8x128xf32>
    %92 = arith.mulf %91, %9 : vector<8x128xf32>
    %c8_51 = arith.constant 8 : index
    %c0_52 = arith.constant 0 : index
    %c0_53 = arith.constant 0 : index
    %93 = vector.load %arg2[%c8_51, %c0_52, %c0_53] : memref<32x8x128xf32, #tpu.memory_space<vmem>>, vector<1x8x128xf32>
    %94 = vector.shape_cast %93 : vector<1x8x128xf32> to vector<8x128xf32>
    %95 = arith.subf %38, %94 : vector<8x128xf32>
    %96 = arith.mulf %95, %95 : vector<8x128xf32>
    %c9 = arith.constant 9 : index
    %c0_54 = arith.constant 0 : index
    %c0_55 = arith.constant 0 : index
    %97 = vector.load %arg2[%c9, %c0_54, %c0_55] : memref<32x8x128xf32, #tpu.memory_space<vmem>>, vector<1x8x128xf32>
    %98 = vector.shape_cast %97 : vector<1x8x128xf32> to vector<8x128xf32>
    %99 = arith.subf %40, %98 : vector<8x128xf32>
    %100 = arith.mulf %99, %99 : vector<8x128xf32>
    %101 = arith.addf %96, %100 : vector<8x128xf32>
    %c10 = arith.constant 10 : index
    %c0_56 = arith.constant 0 : index
    %c0_57 = arith.constant 0 : index
    %102 = vector.load %arg2[%c10, %c0_56, %c0_57] : memref<32x8x128xf32, #tpu.memory_space<vmem>>, vector<1x8x128xf32>
    %103 = vector.shape_cast %102 : vector<1x8x128xf32> to vector<8x128xf32>
    %104 = arith.subf %42, %103 : vector<8x128xf32>
    %105 = arith.mulf %104, %104 : vector<8x128xf32>
    %106 = arith.addf %101, %105 : vector<8x128xf32>
    %c11 = arith.constant 11 : index
    %c0_58 = arith.constant 0 : index
    %c0_59 = arith.constant 0 : index
    %107 = vector.load %arg2[%c11, %c0_58, %c0_59] : memref<32x8x128xf32, #tpu.memory_space<vmem>>, vector<1x8x128xf32>
    %108 = vector.shape_cast %107 : vector<1x8x128xf32> to vector<8x128xf32>
    %109 = arith.subf %44, %108 : vector<8x128xf32>
    %110 = arith.mulf %109, %109 : vector<8x128xf32>
    %111 = arith.addf %106, %110 : vector<8x128xf32>
    %c12 = arith.constant 12 : index
    %c0_60 = arith.constant 0 : index
    %c0_61 = arith.constant 0 : index
    %112 = vector.load %arg2[%c12, %c0_60, %c0_61] : memref<32x8x128xf32, #tpu.memory_space<vmem>>, vector<1x8x128xf32>
    %113 = vector.shape_cast %112 : vector<1x8x128xf32> to vector<8x128xf32>
    %114 = arith.subf %46, %113 : vector<8x128xf32>
    %115 = arith.mulf %114, %114 : vector<8x128xf32>
    %116 = arith.addf %111, %115 : vector<8x128xf32>
    %c13 = arith.constant 13 : index
    %c0_62 = arith.constant 0 : index
    %c0_63 = arith.constant 0 : index
    %117 = vector.load %arg2[%c13, %c0_62, %c0_63] : memref<32x8x128xf32, #tpu.memory_space<vmem>>, vector<1x8x128xf32>
    %118 = vector.shape_cast %117 : vector<1x8x128xf32> to vector<8x128xf32>
    %119 = arith.subf %48, %118 : vector<8x128xf32>
    %120 = arith.mulf %119, %119 : vector<8x128xf32>
    %121 = arith.addf %116, %120 : vector<8x128xf32>
    %c14 = arith.constant 14 : index
    %c0_64 = arith.constant 0 : index
    %c0_65 = arith.constant 0 : index
    %122 = vector.load %arg2[%c14, %c0_64, %c0_65] : memref<32x8x128xf32, #tpu.memory_space<vmem>>, vector<1x8x128xf32>
    %123 = vector.shape_cast %122 : vector<1x8x128xf32> to vector<8x128xf32>
    %124 = arith.subf %50, %123 : vector<8x128xf32>
    %125 = arith.mulf %124, %124 : vector<8x128xf32>
    %126 = arith.addf %121, %125 : vector<8x128xf32>
    %c15 = arith.constant 15 : index
    %c0_66 = arith.constant 0 : index
    %c0_67 = arith.constant 0 : index
    %127 = vector.load %arg2[%c15, %c0_66, %c0_67] : memref<32x8x128xf32, #tpu.memory_space<vmem>>, vector<1x8x128xf32>
    %128 = vector.shape_cast %127 : vector<1x8x128xf32> to vector<8x128xf32>
    %129 = arith.subf %52, %128 : vector<8x128xf32>
    %130 = arith.mulf %129, %129 : vector<8x128xf32>
    %131 = arith.addf %126, %130 : vector<8x128xf32>
    %132 = arith.minimumf %91, %131 : vector<8x128xf32>
    %133 = arith.mulf %131, %9 : vector<8x128xf32>
    %c16 = arith.constant 16 : index
    %c0_68 = arith.constant 0 : index
    %c0_69 = arith.constant 0 : index
    %134 = vector.load %arg2[%c16, %c0_68, %c0_69] : memref<32x8x128xf32, #tpu.memory_space<vmem>>, vector<1x8x128xf32>
    %135 = vector.shape_cast %134 : vector<1x8x128xf32> to vector<8x128xf32>
    %136 = arith.subf %38, %135 : vector<8x128xf32>
    %137 = arith.mulf %136, %136 : vector<8x128xf32>
    %c17_70 = arith.constant 17 : index
    %c0_71 = arith.constant 0 : index
    %c0_72 = arith.constant 0 : index
    %138 = vector.load %arg2[%c17_70, %c0_71, %c0_72] : memref<32x8x128xf32, #tpu.memory_space<vmem>>, vector<1x8x128xf32>
    %139 = vector.shape_cast %138 : vector<1x8x128xf32> to vector<8x128xf32>
    %140 = arith.subf %40, %139 : vector<8x128xf32>
    %141 = arith.mulf %140, %140 : vector<8x128xf32>
    %142 = arith.addf %137, %141 : vector<8x128xf32>
    %c18 = arith.constant 18 : index
    %c0_73 = arith.constant 0 : index
    %c0_74 = arith.constant 0 : index
    %143 = vector.load %arg2[%c18, %c0_73, %c0_74] : memref<32x8x128xf32, #tpu.memory_space<vmem>>, vector<1x8x128xf32>
    %144 = vector.shape_cast %143 : vector<1x8x128xf32> to vector<8x128xf32>
    %145 = arith.subf %42, %144 : vector<8x128xf32>
    %146 = arith.mulf %145, %145 : vector<8x128xf32>
    %147 = arith.addf %142, %146 : vector<8x128xf32>
    %c19 = arith.constant 19 : index
    %c0_75 = arith.constant 0 : index
    %c0_76 = arith.constant 0 : index
    %148 = vector.load %arg2[%c19, %c0_75, %c0_76] : memref<32x8x128xf32, #tpu.memory_space<vmem>>, vector<1x8x128xf32>
    %149 = vector.shape_cast %148 : vector<1x8x128xf32> to vector<8x128xf32>
    %150 = arith.subf %44, %149 : vector<8x128xf32>
    %151 = arith.mulf %150, %150 : vector<8x128xf32>
    %152 = arith.addf %147, %151 : vector<8x128xf32>
    %c20 = arith.constant 20 : index
    %c0_77 = arith.constant 0 : index
    %c0_78 = arith.constant 0 : index
    %153 = vector.load %arg2[%c20, %c0_77, %c0_78] : memref<32x8x128xf32, #tpu.memory_space<vmem>>, vector<1x8x128xf32>
    %154 = vector.shape_cast %153 : vector<1x8x128xf32> to vector<8x128xf32>
    %155 = arith.subf %46, %154 : vector<8x128xf32>
    %156 = arith.mulf %155, %155 : vector<8x128xf32>
    %157 = arith.addf %152, %156 : vector<8x128xf32>
    %c21 = arith.constant 21 : index
    %c0_79 = arith.constant 0 : index
    %c0_80 = arith.constant 0 : index
    %158 = vector.load %arg2[%c21, %c0_79, %c0_80] : memref<32x8x128xf32, #tpu.memory_space<vmem>>, vector<1x8x128xf32>
    %159 = vector.shape_cast %158 : vector<1x8x128xf32> to vector<8x128xf32>
    %160 = arith.subf %48, %159 : vector<8x128xf32>
    %161 = arith.mulf %160, %160 : vector<8x128xf32>
    %162 = arith.addf %157, %161 : vector<8x128xf32>
    %c22 = arith.constant 22 : index
    %c0_81 = arith.constant 0 : index
    %c0_82 = arith.constant 0 : index
    %163 = vector.load %arg2[%c22, %c0_81, %c0_82] : memref<32x8x128xf32, #tpu.memory_space<vmem>>, vector<1x8x128xf32>
    %164 = vector.shape_cast %163 : vector<1x8x128xf32> to vector<8x128xf32>
    %165 = arith.subf %50, %164 : vector<8x128xf32>
    %166 = arith.mulf %165, %165 : vector<8x128xf32>
    %167 = arith.addf %162, %166 : vector<8x128xf32>
    %c23 = arith.constant 23 : index
    %c0_83 = arith.constant 0 : index
    %c0_84 = arith.constant 0 : index
    %168 = vector.load %arg2[%c23, %c0_83, %c0_84] : memref<32x8x128xf32, #tpu.memory_space<vmem>>, vector<1x8x128xf32>
    %169 = vector.shape_cast %168 : vector<1x8x128xf32> to vector<8x128xf32>
    %170 = arith.subf %52, %169 : vector<8x128xf32>
    %171 = arith.mulf %170, %170 : vector<8x128xf32>
    %172 = arith.addf %167, %171 : vector<8x128xf32>
    %173 = arith.minimumf %132, %172 : vector<8x128xf32>
    %174 = arith.mulf %172, %9 : vector<8x128xf32>
    %c24 = arith.constant 24 : index
    %c0_85 = arith.constant 0 : index
    %c0_86 = arith.constant 0 : index
    %175 = vector.load %arg2[%c24, %c0_85, %c0_86] : memref<32x8x128xf32, #tpu.memory_space<vmem>>, vector<1x8x128xf32>
    %176 = vector.shape_cast %175 : vector<1x8x128xf32> to vector<8x128xf32>
    %177 = arith.subf %38, %176 : vector<8x128xf32>
    %178 = arith.mulf %177, %177 : vector<8x128xf32>
    %c25 = arith.constant 25 : index
    %c0_87 = arith.constant 0 : index
    %c0_88 = arith.constant 0 : index
    %179 = vector.load %arg2[%c25, %c0_87, %c0_88] : memref<32x8x128xf32, #tpu.memory_space<vmem>>, vector<1x8x128xf32>
    %180 = vector.shape_cast %179 : vector<1x8x128xf32> to vector<8x128xf32>
    %181 = arith.subf %40, %180 : vector<8x128xf32>
    %182 = arith.mulf %181, %181 : vector<8x128xf32>
    %183 = arith.addf %178, %182 : vector<8x128xf32>
    %c26_89 = arith.constant 26 : index
    %c0_90 = arith.constant 0 : index
    %c0_91 = arith.constant 0 : index
    %184 = vector.load %arg2[%c26_89, %c0_90, %c0_91] : memref<32x8x128xf32, #tpu.memory_space<vmem>>, vector<1x8x128xf32>
    %185 = vector.shape_cast %184 : vector<1x8x128xf32> to vector<8x128xf32>
    %186 = arith.subf %42, %185 : vector<8x128xf32>
    %187 = arith.mulf %186, %186 : vector<8x128xf32>
    %188 = arith.addf %183, %187 : vector<8x128xf32>
    %c27 = arith.constant 27 : index
    %c0_92 = arith.constant 0 : index
    %c0_93 = arith.constant 0 : index
    %189 = vector.load %arg2[%c27, %c0_92, %c0_93] : memref<32x8x128xf32, #tpu.memory_space<vmem>>, vector<1x8x128xf32>
    %190 = vector.shape_cast %189 : vector<1x8x128xf32> to vector<8x128xf32>
    %191 = arith.subf %44, %190 : vector<8x128xf32>
    %192 = arith.mulf %191, %191 : vector<8x128xf32>
    %193 = arith.addf %188, %192 : vector<8x128xf32>
    %c28 = arith.constant 28 : index
    %c0_94 = arith.constant 0 : index
    %c0_95 = arith.constant 0 : index
    %194 = vector.load %arg2[%c28, %c0_94, %c0_95] : memref<32x8x128xf32, #tpu.memory_space<vmem>>, vector<1x8x128xf32>
    %195 = vector.shape_cast %194 : vector<1x8x128xf32> to vector<8x128xf32>
    %196 = arith.subf %46, %195 : vector<8x128xf32>
    %197 = arith.mulf %196, %196 : vector<8x128xf32>
    %198 = arith.addf %193, %197 : vector<8x128xf32>
    %c29 = arith.constant 29 : index
    %c0_96 = arith.constant 0 : index
    %c0_97 = arith.constant 0 : index
    %199 = vector.load %arg2[%c29, %c0_96, %c0_97] : memref<32x8x128xf32, #tpu.memory_space<vmem>>, vector<1x8x128xf32>
    %200 = vector.shape_cast %199 : vector<1x8x128xf32> to vector<8x128xf32>
    %201 = arith.subf %48, %200 : vector<8x128xf32>
    %202 = arith.mulf %201, %201 : vector<8x128xf32>
    %203 = arith.addf %198, %202 : vector<8x128xf32>
    %c30 = arith.constant 30 : index
    %c0_98 = arith.constant 0 : index
    %c0_99 = arith.constant 0 : index
    %204 = vector.load %arg2[%c30, %c0_98, %c0_99] : memref<32x8x128xf32, #tpu.memory_space<vmem>>, vector<1x8x128xf32>
    %205 = vector.shape_cast %204 : vector<1x8x128xf32> to vector<8x128xf32>
    %206 = arith.subf %50, %205 : vector<8x128xf32>
    %207 = arith.mulf %206, %206 : vector<8x128xf32>
    %208 = arith.addf %203, %207 : vector<8x128xf32>
    %c31 = arith.constant 31 : index
    %c0_100 = arith.constant 0 : index
    %c0_101 = arith.constant 0 : index
    %209 = vector.load %arg2[%c31, %c0_100, %c0_101] : memref<32x8x128xf32, #tpu.memory_space<vmem>>, vector<1x8x128xf32>
    %210 = vector.shape_cast %209 : vector<1x8x128xf32> to vector<8x128xf32>
    %211 = arith.subf %52, %210 : vector<8x128xf32>
    %212 = arith.mulf %211, %211 : vector<8x128xf32>
    %213 = arith.addf %208, %212 : vector<8x128xf32>
    %214 = arith.minimumf %173, %213 : vector<8x128xf32>
    %215 = arith.mulf %213, %9 : vector<8x128xf32>
    %c9_102 = arith.constant 9 : index
    %c0_103 = arith.constant 0 : index
    %c0_104 = arith.constant 0 : index
    %216 = vector.load %arg1[%c9_102, %c0_103, %c0_104] : memref<36x8x128xf32, #tpu.memory_space<vmem>>, vector<1x8x128xf32>
    %217 = vector.shape_cast %216 : vector<1x8x128xf32> to vector<8x128xf32>
    %c10_105 = arith.constant 10 : index
    %c0_106 = arith.constant 0 : index
    %c0_107 = arith.constant 0 : index
    %218 = vector.load %arg1[%c10_105, %c0_106, %c0_107] : memref<36x8x128xf32, #tpu.memory_space<vmem>>, vector<1x8x128xf32>
    %219 = vector.shape_cast %218 : vector<1x8x128xf32> to vector<8x128xf32>
    %c11_108 = arith.constant 11 : index
    %c0_109 = arith.constant 0 : index
    %c0_110 = arith.constant 0 : index
    %220 = vector.load %arg1[%c11_108, %c0_109, %c0_110] : memref<36x8x128xf32, #tpu.memory_space<vmem>>, vector<1x8x128xf32>
    %221 = vector.shape_cast %220 : vector<1x8x128xf32> to vector<8x128xf32>
    %c12_111 = arith.constant 12 : index
    %c0_112 = arith.constant 0 : index
    %c0_113 = arith.constant 0 : index
    %222 = vector.load %arg1[%c12_111, %c0_112, %c0_113] : memref<36x8x128xf32, #tpu.memory_space<vmem>>, vector<1x8x128xf32>
    %223 = vector.shape_cast %222 : vector<1x8x128xf32> to vector<8x128xf32>
    %c13_114 = arith.constant 13 : index
    %c0_115 = arith.constant 0 : index
    %c0_116 = arith.constant 0 : index
    %224 = vector.load %arg1[%c13_114, %c0_115, %c0_116] : memref<36x8x128xf32, #tpu.memory_space<vmem>>, vector<1x8x128xf32>
    %225 = vector.shape_cast %224 : vector<1x8x128xf32> to vector<8x128xf32>
    %c14_117 = arith.constant 14 : index
    %c0_118 = arith.constant 0 : index
    %c0_119 = arith.constant 0 : index
    %226 = vector.load %arg1[%c14_117, %c0_118, %c0_119] : memref<36x8x128xf32, #tpu.memory_space<vmem>>, vector<1x8x128xf32>
    %227 = vector.shape_cast %226 : vector<1x8x128xf32> to vector<8x128xf32>
    %c15_120 = arith.constant 15 : index
    %c0_121 = arith.constant 0 : index
    %c0_122 = arith.constant 0 : index
    %228 = vector.load %arg1[%c15_120, %c0_121, %c0_122] : memref<36x8x128xf32, #tpu.memory_space<vmem>>, vector<1x8x128xf32>
    %229 = vector.shape_cast %228 : vector<1x8x128xf32> to vector<8x128xf32>
    %c16_123 = arith.constant 16 : index
    %c0_124 = arith.constant 0 : index
    %c0_125 = arith.constant 0 : index
    %230 = vector.load %arg1[%c16_123, %c0_124, %c0_125] : memref<36x8x128xf32, #tpu.memory_space<vmem>>, vector<1x8x128xf32>
    %231 = vector.shape_cast %230 : vector<1x8x128xf32> to vector<8x128xf32>
    %c0_126 = arith.constant 0 : index
    %c0_127 = arith.constant 0 : index
    %c0_128 = arith.constant 0 : index
    %232 = vector.load %arg2[%c0_126, %c0_127, %c0_128] : memref<32x8x128xf32, #tpu.memory_space<vmem>>, vector<1x8x128xf32>
    %233 = vector.shape_cast %232 : vector<1x8x128xf32> to vector<8x128xf32>
    %234 = arith.subf %217, %233 : vector<8x128xf32>
    %235 = arith.mulf %234, %234 : vector<8x128xf32>
    %c1_129 = arith.constant 1 : index
    %c0_130 = arith.constant 0 : index
    %c0_131 = arith.constant 0 : index
    %236 = vector.load %arg2[%c1_129, %c0_130, %c0_131] : memref<32x8x128xf32, #tpu.memory_space<vmem>>, vector<1x8x128xf32>
    %237 = vector.shape_cast %236 : vector<1x8x128xf32> to vector<8x128xf32>
    %238 = arith.subf %219, %237 : vector<8x128xf32>
    %239 = arith.mulf %238, %238 : vector<8x128xf32>
    %240 = arith.addf %235, %239 : vector<8x128xf32>
    %c2_132 = arith.constant 2 : index
    %c0_133 = arith.constant 0 : index
    %c0_134 = arith.constant 0 : index
    %241 = vector.load %arg2[%c2_132, %c0_133, %c0_134] : memref<32x8x128xf32, #tpu.memory_space<vmem>>, vector<1x8x128xf32>
    %242 = vector.shape_cast %241 : vector<1x8x128xf32> to vector<8x128xf32>
    %243 = arith.subf %221, %242 : vector<8x128xf32>
    %244 = arith.mulf %243, %243 : vector<8x128xf32>
    %245 = arith.addf %240, %244 : vector<8x128xf32>
    %c3_135 = arith.constant 3 : index
    %c0_136 = arith.constant 0 : index
    %c0_137 = arith.constant 0 : index
    %246 = vector.load %arg2[%c3_135, %c0_136, %c0_137] : memref<32x8x128xf32, #tpu.memory_space<vmem>>, vector<1x8x128xf32>
    %247 = vector.shape_cast %246 : vector<1x8x128xf32> to vector<8x128xf32>
    %248 = arith.subf %223, %247 : vector<8x128xf32>
    %249 = arith.mulf %248, %248 : vector<8x128xf32>
    %250 = arith.addf %245, %249 : vector<8x128xf32>
    %c4_138 = arith.constant 4 : index
    %c0_139 = arith.constant 0 : index
    %c0_140 = arith.constant 0 : index
    %251 = vector.load %arg2[%c4_138, %c0_139, %c0_140] : memref<32x8x128xf32, #tpu.memory_space<vmem>>, vector<1x8x128xf32>
    %252 = vector.shape_cast %251 : vector<1x8x128xf32> to vector<8x128xf32>
    %253 = arith.subf %225, %252 : vector<8x128xf32>
    %254 = arith.mulf %253, %253 : vector<8x128xf32>
    %255 = arith.addf %250, %254 : vector<8x128xf32>
    %c5_141 = arith.constant 5 : index
    %c0_142 = arith.constant 0 : index
    %c0_143 = arith.constant 0 : index
    %256 = vector.load %arg2[%c5_141, %c0_142, %c0_143] : memref<32x8x128xf32, #tpu.memory_space<vmem>>, vector<1x8x128xf32>
    %257 = vector.shape_cast %256 : vector<1x8x128xf32> to vector<8x128xf32>
    %258 = arith.subf %227, %257 : vector<8x128xf32>
    %259 = arith.mulf %258, %258 : vector<8x128xf32>
    %260 = arith.addf %255, %259 : vector<8x128xf32>
    %c6_144 = arith.constant 6 : index
    %c0_145 = arith.constant 0 : index
    %c0_146 = arith.constant 0 : index
    %261 = vector.load %arg2[%c6_144, %c0_145, %c0_146] : memref<32x8x128xf32, #tpu.memory_space<vmem>>, vector<1x8x128xf32>
    %262 = vector.shape_cast %261 : vector<1x8x128xf32> to vector<8x128xf32>
    %263 = arith.subf %229, %262 : vector<8x128xf32>
    %264 = arith.mulf %263, %263 : vector<8x128xf32>
    %265 = arith.addf %260, %264 : vector<8x128xf32>
    %c7_147 = arith.constant 7 : index
    %c0_148 = arith.constant 0 : index
    %c0_149 = arith.constant 0 : index
    %266 = vector.load %arg2[%c7_147, %c0_148, %c0_149] : memref<32x8x128xf32, #tpu.memory_space<vmem>>, vector<1x8x128xf32>
    %267 = vector.shape_cast %266 : vector<1x8x128xf32> to vector<8x128xf32>
    %268 = arith.subf %231, %267 : vector<8x128xf32>
    %269 = arith.mulf %268, %268 : vector<8x128xf32>
    %270 = arith.addf %265, %269 : vector<8x128xf32>
    %271 = arith.mulf %270, %18 : vector<8x128xf32>
    %272 = arith.minimumf %92, %271 : vector<8x128xf32>
    %c8_150 = arith.constant 8 : index
    %c0_151 = arith.constant 0 : index
    %c0_152 = arith.constant 0 : index
    %273 = vector.load %arg2[%c8_150, %c0_151, %c0_152] : memref<32x8x128xf32, #tpu.memory_space<vmem>>, vector<1x8x128xf32>
    %274 = vector.shape_cast %273 : vector<1x8x128xf32> to vector<8x128xf32>
    %275 = arith.subf %217, %274 : vector<8x128xf32>
    %276 = arith.mulf %275, %275 : vector<8x128xf32>
    %c9_153 = arith.constant 9 : index
    %c0_154 = arith.constant 0 : index
    %c0_155 = arith.constant 0 : index
    %277 = vector.load %arg2[%c9_153, %c0_154, %c0_155] : memref<32x8x128xf32, #tpu.memory_space<vmem>>, vector<1x8x128xf32>
    %278 = vector.shape_cast %277 : vector<1x8x128xf32> to vector<8x128xf32>
    %279 = arith.subf %219, %278 : vector<8x128xf32>
    %280 = arith.mulf %279, %279 : vector<8x128xf32>
    %281 = arith.addf %276, %280 : vector<8x128xf32>
    %c10_156 = arith.constant 10 : index
    %c0_157 = arith.constant 0 : index
    %c0_158 = arith.constant 0 : index
    %282 = vector.load %arg2[%c10_156, %c0_157, %c0_158] : memref<32x8x128xf32, #tpu.memory_space<vmem>>, vector<1x8x128xf32>
    %283 = vector.shape_cast %282 : vector<1x8x128xf32> to vector<8x128xf32>
    %284 = arith.subf %221, %283 : vector<8x128xf32>
    %285 = arith.mulf %284, %284 : vector<8x128xf32>
    %286 = arith.addf %281, %285 : vector<8x128xf32>
    %c11_159 = arith.constant 11 : index
    %c0_160 = arith.constant 0 : index
    %c0_161 = arith.constant 0 : index
    %287 = vector.load %arg2[%c11_159, %c0_160, %c0_161] : memref<32x8x128xf32, #tpu.memory_space<vmem>>, vector<1x8x128xf32>
    %288 = vector.shape_cast %287 : vector<1x8x128xf32> to vector<8x128xf32>
    %289 = arith.subf %223, %288 : vector<8x128xf32>
    %290 = arith.mulf %289, %289 : vector<8x128xf32>
    %291 = arith.addf %286, %290 : vector<8x128xf32>
    %c12_162 = arith.constant 12 : index
    %c0_163 = arith.constant 0 : index
    %c0_164 = arith.constant 0 : index
    %292 = vector.load %arg2[%c12_162, %c0_163, %c0_164] : memref<32x8x128xf32, #tpu.memory_space<vmem>>, vector<1x8x128xf32>
    %293 = vector.shape_cast %292 : vector<1x8x128xf32> to vector<8x128xf32>
    %294 = arith.subf %225, %293 : vector<8x128xf32>
    %295 = arith.mulf %294, %294 : vector<8x128xf32>
    %296 = arith.addf %291, %295 : vector<8x128xf32>
    %c13_165 = arith.constant 13 : index
    %c0_166 = arith.constant 0 : index
    %c0_167 = arith.constant 0 : index
    %297 = vector.load %arg2[%c13_165, %c0_166, %c0_167] : memref<32x8x128xf32, #tpu.memory_space<vmem>>, vector<1x8x128xf32>
    %298 = vector.shape_cast %297 : vector<1x8x128xf32> to vector<8x128xf32>
    %299 = arith.subf %227, %298 : vector<8x128xf32>
    %300 = arith.mulf %299, %299 : vector<8x128xf32>
    %301 = arith.addf %296, %300 : vector<8x128xf32>
    %c14_168 = arith.constant 14 : index
    %c0_169 = arith.constant 0 : index
    %c0_170 = arith.constant 0 : index
    %302 = vector.load %arg2[%c14_168, %c0_169, %c0_170] : memref<32x8x128xf32, #tpu.memory_space<vmem>>, vector<1x8x128xf32>
    %303 = vector.shape_cast %302 : vector<1x8x128xf32> to vector<8x128xf32>
    %304 = arith.subf %229, %303 : vector<8x128xf32>
    %305 = arith.mulf %304, %304 : vector<8x128xf32>
    %306 = arith.addf %301, %305 : vector<8x128xf32>
    %c15_171 = arith.constant 15 : index
    %c0_172 = arith.constant 0 : index
    %c0_173 = arith.constant 0 : index
    %307 = vector.load %arg2[%c15_171, %c0_172, %c0_173] : memref<32x8x128xf32, #tpu.memory_space<vmem>>, vector<1x8x128xf32>
    %308 = vector.shape_cast %307 : vector<1x8x128xf32> to vector<8x128xf32>
    %309 = arith.subf %231, %308 : vector<8x128xf32>
    %310 = arith.mulf %309, %309 : vector<8x128xf32>
    %311 = arith.addf %306, %310 : vector<8x128xf32>
    %312 = arith.minimumf %270, %311 : vector<8x128xf32>
    %313 = arith.mulf %311, %18 : vector<8x128xf32>
    %314 = arith.minimumf %133, %313 : vector<8x128xf32>
    %c16_174 = arith.constant 16 : index
    %c0_175 = arith.constant 0 : index
    %c0_176 = arith.constant 0 : index
    %315 = vector.load %arg2[%c16_174, %c0_175, %c0_176] : memref<32x8x128xf32, #tpu.memory_space<vmem>>, vector<1x8x128xf32>
    %316 = vector.shape_cast %315 : vector<1x8x128xf32> to vector<8x128xf32>
    %317 = arith.subf %217, %316 : vector<8x128xf32>
    %318 = arith.mulf %317, %317 : vector<8x128xf32>
    %c17_177 = arith.constant 17 : index
    %c0_178 = arith.constant 0 : index
    %c0_179 = arith.constant 0 : index
    %319 = vector.load %arg2[%c17_177, %c0_178, %c0_179] : memref<32x8x128xf32, #tpu.memory_space<vmem>>, vector<1x8x128xf32>
    %320 = vector.shape_cast %319 : vector<1x8x128xf32> to vector<8x128xf32>
    %321 = arith.subf %219, %320 : vector<8x128xf32>
    %322 = arith.mulf %321, %321 : vector<8x128xf32>
    %323 = arith.addf %318, %322 : vector<8x128xf32>
    %c18_180 = arith.constant 18 : index
    %c0_181 = arith.constant 0 : index
    %c0_182 = arith.constant 0 : index
    %324 = vector.load %arg2[%c18_180, %c0_181, %c0_182] : memref<32x8x128xf32, #tpu.memory_space<vmem>>, vector<1x8x128xf32>
    %325 = vector.shape_cast %324 : vector<1x8x128xf32> to vector<8x128xf32>
    %326 = arith.subf %221, %325 : vector<8x128xf32>
    %327 = arith.mulf %326, %326 : vector<8x128xf32>
    %328 = arith.addf %323, %327 : vector<8x128xf32>
    %c19_183 = arith.constant 19 : index
    %c0_184 = arith.constant 0 : index
    %c0_185 = arith.constant 0 : index
    %329 = vector.load %arg2[%c19_183, %c0_184, %c0_185] : memref<32x8x128xf32, #tpu.memory_space<vmem>>, vector<1x8x128xf32>
    %330 = vector.shape_cast %329 : vector<1x8x128xf32> to vector<8x128xf32>
    %331 = arith.subf %223, %330 : vector<8x128xf32>
    %332 = arith.mulf %331, %331 : vector<8x128xf32>
    %333 = arith.addf %328, %332 : vector<8x128xf32>
    %c20_186 = arith.constant 20 : index
    %c0_187 = arith.constant 0 : index
    %c0_188 = arith.constant 0 : index
    %334 = vector.load %arg2[%c20_186, %c0_187, %c0_188] : memref<32x8x128xf32, #tpu.memory_space<vmem>>, vector<1x8x128xf32>
    %335 = vector.shape_cast %334 : vector<1x8x128xf32> to vector<8x128xf32>
    %336 = arith.subf %225, %335 : vector<8x128xf32>
    %337 = arith.mulf %336, %336 : vector<8x128xf32>
    %338 = arith.addf %333, %337 : vector<8x128xf32>
    %c21_189 = arith.constant 21 : index
    %c0_190 = arith.constant 0 : index
    %c0_191 = arith.constant 0 : index
    %339 = vector.load %arg2[%c21_189, %c0_190, %c0_191] : memref<32x8x128xf32, #tpu.memory_space<vmem>>, vector<1x8x128xf32>
    %340 = vector.shape_cast %339 : vector<1x8x128xf32> to vector<8x128xf32>
    %341 = arith.subf %227, %340 : vector<8x128xf32>
    %342 = arith.mulf %341, %341 : vector<8x128xf32>
    %343 = arith.addf %338, %342 : vector<8x128xf32>
    %c22_192 = arith.constant 22 : index
    %c0_193 = arith.constant 0 : index
    %c0_194 = arith.constant 0 : index
    %344 = vector.load %arg2[%c22_192, %c0_193, %c0_194] : memref<32x8x128xf32, #tpu.memory_space<vmem>>, vector<1x8x128xf32>
    %345 = vector.shape_cast %344 : vector<1x8x128xf32> to vector<8x128xf32>
    %346 = arith.subf %229, %345 : vector<8x128xf32>
    %347 = arith.mulf %346, %346 : vector<8x128xf32>
    %348 = arith.addf %343, %347 : vector<8x128xf32>
    %c23_195 = arith.constant 23 : index
    %c0_196 = arith.constant 0 : index
    %c0_197 = arith.constant 0 : index
    %349 = vector.load %arg2[%c23_195, %c0_196, %c0_197] : memref<32x8x128xf32, #tpu.memory_space<vmem>>, vector<1x8x128xf32>
    %350 = vector.shape_cast %349 : vector<1x8x128xf32> to vector<8x128xf32>
    %351 = arith.subf %231, %350 : vector<8x128xf32>
    %352 = arith.mulf %351, %351 : vector<8x128xf32>
    %353 = arith.addf %348, %352 : vector<8x128xf32>
    %354 = arith.minimumf %312, %353 : vector<8x128xf32>
    %355 = arith.mulf %353, %18 : vector<8x128xf32>
    %356 = arith.minimumf %174, %355 : vector<8x128xf32>
    %c24_198 = arith.constant 24 : index
    %c0_199 = arith.constant 0 : index
    %c0_200 = arith.constant 0 : index
    %357 = vector.load %arg2[%c24_198, %c0_199, %c0_200] : memref<32x8x128xf32, #tpu.memory_space<vmem>>, vector<1x8x128xf32>
    %358 = vector.shape_cast %357 : vector<1x8x128xf32> to vector<8x128xf32>
    %359 = arith.subf %217, %358 : vector<8x128xf32>
    %360 = arith.mulf %359, %359 : vector<8x128xf32>
    %c25_201 = arith.constant 25 : index
    %c0_202 = arith.constant 0 : index
    %c0_203 = arith.constant 0 : index
    %361 = vector.load %arg2[%c25_201, %c0_202, %c0_203] : memref<32x8x128xf32, #tpu.memory_space<vmem>>, vector<1x8x128xf32>
    %362 = vector.shape_cast %361 : vector<1x8x128xf32> to vector<8x128xf32>
    %363 = arith.subf %219, %362 : vector<8x128xf32>
    %364 = arith.mulf %363, %363 : vector<8x128xf32>
    %365 = arith.addf %360, %364 : vector<8x128xf32>
    %c26_204 = arith.constant 26 : index
    %c0_205 = arith.constant 0 : index
    %c0_206 = arith.constant 0 : index
    %366 = vector.load %arg2[%c26_204, %c0_205, %c0_206] : memref<32x8x128xf32, #tpu.memory_space<vmem>>, vector<1x8x128xf32>
    %367 = vector.shape_cast %366 : vector<1x8x128xf32> to vector<8x128xf32>
    %368 = arith.subf %221, %367 : vector<8x128xf32>
    %369 = arith.mulf %368, %368 : vector<8x128xf32>
    %370 = arith.addf %365, %369 : vector<8x128xf32>
    %c27_207 = arith.constant 27 : index
    %c0_208 = arith.constant 0 : index
    %c0_209 = arith.constant 0 : index
    %371 = vector.load %arg2[%c27_207, %c0_208, %c0_209] : memref<32x8x128xf32, #tpu.memory_space<vmem>>, vector<1x8x128xf32>
    %372 = vector.shape_cast %371 : vector<1x8x128xf32> to vector<8x128xf32>
    %373 = arith.subf %223, %372 : vector<8x128xf32>
    %374 = arith.mulf %373, %373 : vector<8x128xf32>
    %375 = arith.addf %370, %374 : vector<8x128xf32>
    %c28_210 = arith.constant 28 : index
    %c0_211 = arith.constant 0 : index
    %c0_212 = arith.constant 0 : index
    %376 = vector.load %arg2[%c28_210, %c0_211, %c0_212] : memref<32x8x128xf32, #tpu.memory_space<vmem>>, vector<1x8x128xf32>
    %377 = vector.shape_cast %376 : vector<1x8x128xf32> to vector<8x128xf32>
    %378 = arith.subf %225, %377 : vector<8x128xf32>
    %379 = arith.mulf %378, %378 : vector<8x128xf32>
    %380 = arith.addf %375, %379 : vector<8x128xf32>
    %c29_213 = arith.constant 29 : index
    %c0_214 = arith.constant 0 : index
    %c0_215 = arith.constant 0 : index
    %381 = vector.load %arg2[%c29_213, %c0_214, %c0_215] : memref<32x8x128xf32, #tpu.memory_space<vmem>>, vector<1x8x128xf32>
    %382 = vector.shape_cast %381 : vector<1x8x128xf32> to vector<8x128xf32>
    %383 = arith.subf %227, %382 : vector<8x128xf32>
    %384 = arith.mulf %383, %383 : vector<8x128xf32>
    %385 = arith.addf %380, %384 : vector<8x128xf32>
    %c30_216 = arith.constant 30 : index
    %c0_217 = arith.constant 0 : index
    %c0_218 = arith.constant 0 : index
    %386 = vector.load %arg2[%c30_216, %c0_217, %c0_218] : memref<32x8x128xf32, #tpu.memory_space<vmem>>, vector<1x8x128xf32>
    %387 = vector.shape_cast %386 : vector<1x8x128xf32> to vector<8x128xf32>
    %388 = arith.subf %229, %387 : vector<8x128xf32>
    %389 = arith.mulf %388, %388 : vector<8x128xf32>
    %390 = arith.addf %385, %389 : vector<8x128xf32>
    %c31_219 = arith.constant 31 : index
    %c0_220 = arith.constant 0 : index
    %c0_221 = arith.constant 0 : index
    %391 = vector.load %arg2[%c31_219, %c0_220, %c0_221] : memref<32x8x128xf32, #tpu.memory_space<vmem>>, vector<1x8x128xf32>
    %392 = vector.shape_cast %391 : vector<1x8x128xf32> to vector<8x128xf32>
    %393 = arith.subf %231, %392 : vector<8x128xf32>
    %394 = arith.mulf %393, %393 : vector<8x128xf32>
    %395 = arith.addf %390, %394 : vector<8x128xf32>
    %396 = arith.minimumf %354, %395 : vector<8x128xf32>
    %397 = arith.mulf %395, %18 : vector<8x128xf32>
    %398 = arith.minimumf %215, %397 : vector<8x128xf32>
    %c18_222 = arith.constant 18 : index
    %c0_223 = arith.constant 0 : index
    %c0_224 = arith.constant 0 : index
    %399 = vector.load %arg1[%c18_222, %c0_223, %c0_224] : memref<36x8x128xf32, #tpu.memory_space<vmem>>, vector<1x8x128xf32>
    %400 = vector.shape_cast %399 : vector<1x8x128xf32> to vector<8x128xf32>
    %c19_225 = arith.constant 19 : index
    %c0_226 = arith.constant 0 : index
    %c0_227 = arith.constant 0 : index
    %401 = vector.load %arg1[%c19_225, %c0_226, %c0_227] : memref<36x8x128xf32, #tpu.memory_space<vmem>>, vector<1x8x128xf32>
    %402 = vector.shape_cast %401 : vector<1x8x128xf32> to vector<8x128xf32>
    %c20_228 = arith.constant 20 : index
    %c0_229 = arith.constant 0 : index
    %c0_230 = arith.constant 0 : index
    %403 = vector.load %arg1[%c20_228, %c0_229, %c0_230] : memref<36x8x128xf32, #tpu.memory_space<vmem>>, vector<1x8x128xf32>
    %404 = vector.shape_cast %403 : vector<1x8x128xf32> to vector<8x128xf32>
    %c21_231 = arith.constant 21 : index
    %c0_232 = arith.constant 0 : index
    %c0_233 = arith.constant 0 : index
    %405 = vector.load %arg1[%c21_231, %c0_232, %c0_233] : memref<36x8x128xf32, #tpu.memory_space<vmem>>, vector<1x8x128xf32>
    %406 = vector.shape_cast %405 : vector<1x8x128xf32> to vector<8x128xf32>
    %c22_234 = arith.constant 22 : index
    %c0_235 = arith.constant 0 : index
    %c0_236 = arith.constant 0 : index
    %407 = vector.load %arg1[%c22_234, %c0_235, %c0_236] : memref<36x8x128xf32, #tpu.memory_space<vmem>>, vector<1x8x128xf32>
    %408 = vector.shape_cast %407 : vector<1x8x128xf32> to vector<8x128xf32>
    %c23_237 = arith.constant 23 : index
    %c0_238 = arith.constant 0 : index
    %c0_239 = arith.constant 0 : index
    %409 = vector.load %arg1[%c23_237, %c0_238, %c0_239] : memref<36x8x128xf32, #tpu.memory_space<vmem>>, vector<1x8x128xf32>
    %410 = vector.shape_cast %409 : vector<1x8x128xf32> to vector<8x128xf32>
    %c24_240 = arith.constant 24 : index
    %c0_241 = arith.constant 0 : index
    %c0_242 = arith.constant 0 : index
    %411 = vector.load %arg1[%c24_240, %c0_241, %c0_242] : memref<36x8x128xf32, #tpu.memory_space<vmem>>, vector<1x8x128xf32>
    %412 = vector.shape_cast %411 : vector<1x8x128xf32> to vector<8x128xf32>
    %c25_243 = arith.constant 25 : index
    %c0_244 = arith.constant 0 : index
    %c0_245 = arith.constant 0 : index
    %413 = vector.load %arg1[%c25_243, %c0_244, %c0_245] : memref<36x8x128xf32, #tpu.memory_space<vmem>>, vector<1x8x128xf32>
    %414 = vector.shape_cast %413 : vector<1x8x128xf32> to vector<8x128xf32>
    %c0_246 = arith.constant 0 : index
    %c0_247 = arith.constant 0 : index
    %c0_248 = arith.constant 0 : index
    %415 = vector.load %arg2[%c0_246, %c0_247, %c0_248] : memref<32x8x128xf32, #tpu.memory_space<vmem>>, vector<1x8x128xf32>
    %416 = vector.shape_cast %415 : vector<1x8x128xf32> to vector<8x128xf32>
    %417 = arith.subf %400, %416 : vector<8x128xf32>
    %418 = arith.mulf %417, %417 : vector<8x128xf32>
    %c1_249 = arith.constant 1 : index
    %c0_250 = arith.constant 0 : index
    %c0_251 = arith.constant 0 : index
    %419 = vector.load %arg2[%c1_249, %c0_250, %c0_251] : memref<32x8x128xf32, #tpu.memory_space<vmem>>, vector<1x8x128xf32>
    %420 = vector.shape_cast %419 : vector<1x8x128xf32> to vector<8x128xf32>
    %421 = arith.subf %402, %420 : vector<8x128xf32>
    %422 = arith.mulf %421, %421 : vector<8x128xf32>
    %423 = arith.addf %418, %422 : vector<8x128xf32>
    %c2_252 = arith.constant 2 : index
    %c0_253 = arith.constant 0 : index
    %c0_254 = arith.constant 0 : index
    %424 = vector.load %arg2[%c2_252, %c0_253, %c0_254] : memref<32x8x128xf32, #tpu.memory_space<vmem>>, vector<1x8x128xf32>
    %425 = vector.shape_cast %424 : vector<1x8x128xf32> to vector<8x128xf32>
    %426 = arith.subf %404, %425 : vector<8x128xf32>
    %427 = arith.mulf %426, %426 : vector<8x128xf32>
    %428 = arith.addf %423, %427 : vector<8x128xf32>
    %c3_255 = arith.constant 3 : index
    %c0_256 = arith.constant 0 : index
    %c0_257 = arith.constant 0 : index
    %429 = vector.load %arg2[%c3_255, %c0_256, %c0_257] : memref<32x8x128xf32, #tpu.memory_space<vmem>>, vector<1x8x128xf32>
    %430 = vector.shape_cast %429 : vector<1x8x128xf32> to vector<8x128xf32>
    %431 = arith.subf %406, %430 : vector<8x128xf32>
    %432 = arith.mulf %431, %431 : vector<8x128xf32>
    %433 = arith.addf %428, %432 : vector<8x128xf32>
    %c4_258 = arith.constant 4 : index
    %c0_259 = arith.constant 0 : index
    %c0_260 = arith.constant 0 : index
    %434 = vector.load %arg2[%c4_258, %c0_259, %c0_260] : memref<32x8x128xf32, #tpu.memory_space<vmem>>, vector<1x8x128xf32>
    %435 = vector.shape_cast %434 : vector<1x8x128xf32> to vector<8x128xf32>
    %436 = arith.subf %408, %435 : vector<8x128xf32>
    %437 = arith.mulf %436, %436 : vector<8x128xf32>
    %438 = arith.addf %433, %437 : vector<8x128xf32>
    %c5_261 = arith.constant 5 : index
    %c0_262 = arith.constant 0 : index
    %c0_263 = arith.constant 0 : index
    %439 = vector.load %arg2[%c5_261, %c0_262, %c0_263] : memref<32x8x128xf32, #tpu.memory_space<vmem>>, vector<1x8x128xf32>
    %440 = vector.shape_cast %439 : vector<1x8x128xf32> to vector<8x128xf32>
    %441 = arith.subf %410, %440 : vector<8x128xf32>
    %442 = arith.mulf %441, %441 : vector<8x128xf32>
    %443 = arith.addf %438, %442 : vector<8x128xf32>
    %c6_264 = arith.constant 6 : index
    %c0_265 = arith.constant 0 : index
    %c0_266 = arith.constant 0 : index
    %444 = vector.load %arg2[%c6_264, %c0_265, %c0_266] : memref<32x8x128xf32, #tpu.memory_space<vmem>>, vector<1x8x128xf32>
    %445 = vector.shape_cast %444 : vector<1x8x128xf32> to vector<8x128xf32>
    %446 = arith.subf %412, %445 : vector<8x128xf32>
    %447 = arith.mulf %446, %446 : vector<8x128xf32>
    %448 = arith.addf %443, %447 : vector<8x128xf32>
    %c7_267 = arith.constant 7 : index
    %c0_268 = arith.constant 0 : index
    %c0_269 = arith.constant 0 : index
    %449 = vector.load %arg2[%c7_267, %c0_268, %c0_269] : memref<32x8x128xf32, #tpu.memory_space<vmem>>, vector<1x8x128xf32>
    %450 = vector.shape_cast %449 : vector<1x8x128xf32> to vector<8x128xf32>
    %451 = arith.subf %414, %450 : vector<8x128xf32>
    %452 = arith.mulf %451, %451 : vector<8x128xf32>
    %453 = arith.addf %448, %452 : vector<8x128xf32>
    %454 = arith.mulf %453, %27 : vector<8x128xf32>
    %455 = arith.minimumf %272, %454 : vector<8x128xf32>
    %c8_270 = arith.constant 8 : index
    %c0_271 = arith.constant 0 : index
    %c0_272 = arith.constant 0 : index
    %456 = vector.load %arg2[%c8_270, %c0_271, %c0_272] : memref<32x8x128xf32, #tpu.memory_space<vmem>>, vector<1x8x128xf32>
    %457 = vector.shape_cast %456 : vector<1x8x128xf32> to vector<8x128xf32>
    %458 = arith.subf %400, %457 : vector<8x128xf32>
    %459 = arith.mulf %458, %458 : vector<8x128xf32>
    %c9_273 = arith.constant 9 : index
    %c0_274 = arith.constant 0 : index
    %c0_275 = arith.constant 0 : index
    %460 = vector.load %arg2[%c9_273, %c0_274, %c0_275] : memref<32x8x128xf32, #tpu.memory_space<vmem>>, vector<1x8x128xf32>
    %461 = vector.shape_cast %460 : vector<1x8x128xf32> to vector<8x128xf32>
    %462 = arith.subf %402, %461 : vector<8x128xf32>
    %463 = arith.mulf %462, %462 : vector<8x128xf32>
    %464 = arith.addf %459, %463 : vector<8x128xf32>
    %c10_276 = arith.constant 10 : index
    %c0_277 = arith.constant 0 : index
    %c0_278 = arith.constant 0 : index
    %465 = vector.load %arg2[%c10_276, %c0_277, %c0_278] : memref<32x8x128xf32, #tpu.memory_space<vmem>>, vector<1x8x128xf32>
    %466 = vector.shape_cast %465 : vector<1x8x128xf32> to vector<8x128xf32>
    %467 = arith.subf %404, %466 : vector<8x128xf32>
    %468 = arith.mulf %467, %467 : vector<8x128xf32>
    %469 = arith.addf %464, %468 : vector<8x128xf32>
    %c11_279 = arith.constant 11 : index
    %c0_280 = arith.constant 0 : index
    %c0_281 = arith.constant 0 : index
    %470 = vector.load %arg2[%c11_279, %c0_280, %c0_281] : memref<32x8x128xf32, #tpu.memory_space<vmem>>, vector<1x8x128xf32>
    %471 = vector.shape_cast %470 : vector<1x8x128xf32> to vector<8x128xf32>
    %472 = arith.subf %406, %471 : vector<8x128xf32>
    %473 = arith.mulf %472, %472 : vector<8x128xf32>
    %474 = arith.addf %469, %473 : vector<8x128xf32>
    %c12_282 = arith.constant 12 : index
    %c0_283 = arith.constant 0 : index
    %c0_284 = arith.constant 0 : index
    %475 = vector.load %arg2[%c12_282, %c0_283, %c0_284] : memref<32x8x128xf32, #tpu.memory_space<vmem>>, vector<1x8x128xf32>
    %476 = vector.shape_cast %475 : vector<1x8x128xf32> to vector<8x128xf32>
    %477 = arith.subf %408, %476 : vector<8x128xf32>
    %478 = arith.mulf %477, %477 : vector<8x128xf32>
    %479 = arith.addf %474, %478 : vector<8x128xf32>
    %c13_285 = arith.constant 13 : index
    %c0_286 = arith.constant 0 : index
    %c0_287 = arith.constant 0 : index
    %480 = vector.load %arg2[%c13_285, %c0_286, %c0_287] : memref<32x8x128xf32, #tpu.memory_space<vmem>>, vector<1x8x128xf32>
    %481 = vector.shape_cast %480 : vector<1x8x128xf32> to vector<8x128xf32>
    %482 = arith.subf %410, %481 : vector<8x128xf32>
    %483 = arith.mulf %482, %482 : vector<8x128xf32>
    %484 = arith.addf %479, %483 : vector<8x128xf32>
    %c14_288 = arith.constant 14 : index
    %c0_289 = arith.constant 0 : index
    %c0_290 = arith.constant 0 : index
    %485 = vector.load %arg2[%c14_288, %c0_289, %c0_290] : memref<32x8x128xf32, #tpu.memory_space<vmem>>, vector<1x8x128xf32>
    %486 = vector.shape_cast %485 : vector<1x8x128xf32> to vector<8x128xf32>
    %487 = arith.subf %412, %486 : vector<8x128xf32>
    %488 = arith.mulf %487, %487 : vector<8x128xf32>
    %489 = arith.addf %484, %488 : vector<8x128xf32>
    %c15_291 = arith.constant 15 : index
    %c0_292 = arith.constant 0 : index
    %c0_293 = arith.constant 0 : index
    %490 = vector.load %arg2[%c15_291, %c0_292, %c0_293] : memref<32x8x128xf32, #tpu.memory_space<vmem>>, vector<1x8x128xf32>
    %491 = vector.shape_cast %490 : vector<1x8x128xf32> to vector<8x128xf32>
    %492 = arith.subf %414, %491 : vector<8x128xf32>
    %493 = arith.mulf %492, %492 : vector<8x128xf32>
    %494 = arith.addf %489, %493 : vector<8x128xf32>
    %495 = arith.minimumf %453, %494 : vector<8x128xf32>
    %496 = arith.mulf %494, %27 : vector<8x128xf32>
    %497 = arith.minimumf %314, %496 : vector<8x128xf32>
    %c16_294 = arith.constant 16 : index
    %c0_295 = arith.constant 0 : index
    %c0_296 = arith.constant 0 : index
    %498 = vector.load %arg2[%c16_294, %c0_295, %c0_296] : memref<32x8x128xf32, #tpu.memory_space<vmem>>, vector<1x8x128xf32>
    %499 = vector.shape_cast %498 : vector<1x8x128xf32> to vector<8x128xf32>
    %500 = arith.subf %400, %499 : vector<8x128xf32>
    %501 = arith.mulf %500, %500 : vector<8x128xf32>
    %c17_297 = arith.constant 17 : index
    %c0_298 = arith.constant 0 : index
    %c0_299 = arith.constant 0 : index
    %502 = vector.load %arg2[%c17_297, %c0_298, %c0_299] : memref<32x8x128xf32, #tpu.memory_space<vmem>>, vector<1x8x128xf32>
    %503 = vector.shape_cast %502 : vector<1x8x128xf32> to vector<8x128xf32>
    %504 = arith.subf %402, %503 : vector<8x128xf32>
    %505 = arith.mulf %504, %504 : vector<8x128xf32>
    %506 = arith.addf %501, %505 : vector<8x128xf32>
    %c18_300 = arith.constant 18 : index
    %c0_301 = arith.constant 0 : index
    %c0_302 = arith.constant 0 : index
    %507 = vector.load %arg2[%c18_300, %c0_301, %c0_302] : memref<32x8x128xf32, #tpu.memory_space<vmem>>, vector<1x8x128xf32>
    %508 = vector.shape_cast %507 : vector<1x8x128xf32> to vector<8x128xf32>
    %509 = arith.subf %404, %508 : vector<8x128xf32>
    %510 = arith.mulf %509, %509 : vector<8x128xf32>
    %511 = arith.addf %506, %510 : vector<8x128xf32>
    %c19_303 = arith.constant 19 : index
    %c0_304 = arith.constant 0 : index
    %c0_305 = arith.constant 0 : index
    %512 = vector.load %arg2[%c19_303, %c0_304, %c0_305] : memref<32x8x128xf32, #tpu.memory_space<vmem>>, vector<1x8x128xf32>
    %513 = vector.shape_cast %512 : vector<1x8x128xf32> to vector<8x128xf32>
    %514 = arith.subf %406, %513 : vector<8x128xf32>
    %515 = arith.mulf %514, %514 : vector<8x128xf32>
    %516 = arith.addf %511, %515 : vector<8x128xf32>
    %c20_306 = arith.constant 20 : index
    %c0_307 = arith.constant 0 : index
    %c0_308 = arith.constant 0 : index
    %517 = vector.load %arg2[%c20_306, %c0_307, %c0_308] : memref<32x8x128xf32, #tpu.memory_space<vmem>>, vector<1x8x128xf32>
    %518 = vector.shape_cast %517 : vector<1x8x128xf32> to vector<8x128xf32>
    %519 = arith.subf %408, %518 : vector<8x128xf32>
    %520 = arith.mulf %519, %519 : vector<8x128xf32>
    %521 = arith.addf %516, %520 : vector<8x128xf32>
    %c21_309 = arith.constant 21 : index
    %c0_310 = arith.constant 0 : index
    %c0_311 = arith.constant 0 : index
    %522 = vector.load %arg2[%c21_309, %c0_310, %c0_311] : memref<32x8x128xf32, #tpu.memory_space<vmem>>, vector<1x8x128xf32>
    %523 = vector.shape_cast %522 : vector<1x8x128xf32> to vector<8x128xf32>
    %524 = arith.subf %410, %523 : vector<8x128xf32>
    %525 = arith.mulf %524, %524 : vector<8x128xf32>
    %526 = arith.addf %521, %525 : vector<8x128xf32>
    %c22_312 = arith.constant 22 : index
    %c0_313 = arith.constant 0 : index
    %c0_314 = arith.constant 0 : index
    %527 = vector.load %arg2[%c22_312, %c0_313, %c0_314] : memref<32x8x128xf32, #tpu.memory_space<vmem>>, vector<1x8x128xf32>
    %528 = vector.shape_cast %527 : vector<1x8x128xf32> to vector<8x128xf32>
    %529 = arith.subf %412, %528 : vector<8x128xf32>
    %530 = arith.mulf %529, %529 : vector<8x128xf32>
    %531 = arith.addf %526, %530 : vector<8x128xf32>
    %c23_315 = arith.constant 23 : index
    %c0_316 = arith.constant 0 : index
    %c0_317 = arith.constant 0 : index
    %532 = vector.load %arg2[%c23_315, %c0_316, %c0_317] : memref<32x8x128xf32, #tpu.memory_space<vmem>>, vector<1x8x128xf32>
    %533 = vector.shape_cast %532 : vector<1x8x128xf32> to vector<8x128xf32>
    %534 = arith.subf %414, %533 : vector<8x128xf32>
    %535 = arith.mulf %534, %534 : vector<8x128xf32>
    %536 = arith.addf %531, %535 : vector<8x128xf32>
    %537 = arith.minimumf %495, %536 : vector<8x128xf32>
    %538 = arith.mulf %536, %27 : vector<8x128xf32>
    %539 = arith.minimumf %356, %538 : vector<8x128xf32>
    %c24_318 = arith.constant 24 : index
    %c0_319 = arith.constant 0 : index
    %c0_320 = arith.constant 0 : index
    %540 = vector.load %arg2[%c24_318, %c0_319, %c0_320] : memref<32x8x128xf32, #tpu.memory_space<vmem>>, vector<1x8x128xf32>
    %541 = vector.shape_cast %540 : vector<1x8x128xf32> to vector<8x128xf32>
    %542 = arith.subf %400, %541 : vector<8x128xf32>
    %543 = arith.mulf %542, %542 : vector<8x128xf32>
    %c25_321 = arith.constant 25 : index
    %c0_322 = arith.constant 0 : index
    %c0_323 = arith.constant 0 : index
    %544 = vector.load %arg2[%c25_321, %c0_322, %c0_323] : memref<32x8x128xf32, #tpu.memory_space<vmem>>, vector<1x8x128xf32>
    %545 = vector.shape_cast %544 : vector<1x8x128xf32> to vector<8x128xf32>
    %546 = arith.subf %402, %545 : vector<8x128xf32>
    %547 = arith.mulf %546, %546 : vector<8x128xf32>
    %548 = arith.addf %543, %547 : vector<8x128xf32>
    %c26_324 = arith.constant 26 : index
    %c0_325 = arith.constant 0 : index
    %c0_326 = arith.constant 0 : index
    %549 = vector.load %arg2[%c26_324, %c0_325, %c0_326] : memref<32x8x128xf32, #tpu.memory_space<vmem>>, vector<1x8x128xf32>
    %550 = vector.shape_cast %549 : vector<1x8x128xf32> to vector<8x128xf32>
    %551 = arith.subf %404, %550 : vector<8x128xf32>
    %552 = arith.mulf %551, %551 : vector<8x128xf32>
    %553 = arith.addf %548, %552 : vector<8x128xf32>
    %c27_327 = arith.constant 27 : index
    %c0_328 = arith.constant 0 : index
    %c0_329 = arith.constant 0 : index
    %554 = vector.load %arg2[%c27_327, %c0_328, %c0_329] : memref<32x8x128xf32, #tpu.memory_space<vmem>>, vector<1x8x128xf32>
    %555 = vector.shape_cast %554 : vector<1x8x128xf32> to vector<8x128xf32>
    %556 = arith.subf %406, %555 : vector<8x128xf32>
    %557 = arith.mulf %556, %556 : vector<8x128xf32>
    %558 = arith.addf %553, %557 : vector<8x128xf32>
    %c28_330 = arith.constant 28 : index
    %c0_331 = arith.constant 0 : index
    %c0_332 = arith.constant 0 : index
    %559 = vector.load %arg2[%c28_330, %c0_331, %c0_332] : memref<32x8x128xf32, #tpu.memory_space<vmem>>, vector<1x8x128xf32>
    %560 = vector.shape_cast %559 : vector<1x8x128xf32> to vector<8x128xf32>
    %561 = arith.subf %408, %560 : vector<8x128xf32>
    %562 = arith.mulf %561, %561 : vector<8x128xf32>
    %563 = arith.addf %558, %562 : vector<8x128xf32>
    %c29_333 = arith.constant 29 : index
    %c0_334 = arith.constant 0 : index
    %c0_335 = arith.constant 0 : index
    %564 = vector.load %arg2[%c29_333, %c0_334, %c0_335] : memref<32x8x128xf32, #tpu.memory_space<vmem>>, vector<1x8x128xf32>
    %565 = vector.shape_cast %564 : vector<1x8x128xf32> to vector<8x128xf32>
    %566 = arith.subf %410, %565 : vector<8x128xf32>
    %567 = arith.mulf %566, %566 : vector<8x128xf32>
    %568 = arith.addf %563, %567 : vector<8x128xf32>
    %c30_336 = arith.constant 30 : index
    %c0_337 = arith.constant 0 : index
    %c0_338 = arith.constant 0 : index
    %569 = vector.load %arg2[%c30_336, %c0_337, %c0_338] : memref<32x8x128xf32, #tpu.memory_space<vmem>>, vector<1x8x128xf32>
    %570 = vector.shape_cast %569 : vector<1x8x128xf32> to vector<8x128xf32>
    %571 = arith.subf %412, %570 : vector<8x128xf32>
    %572 = arith.mulf %571, %571 : vector<8x128xf32>
    %573 = arith.addf %568, %572 : vector<8x128xf32>
    %c31_339 = arith.constant 31 : index
    %c0_340 = arith.constant 0 : index
    %c0_341 = arith.constant 0 : index
    %574 = vector.load %arg2[%c31_339, %c0_340, %c0_341] : memref<32x8x128xf32, #tpu.memory_space<vmem>>, vector<1x8x128xf32>
    %575 = vector.shape_cast %574 : vector<1x8x128xf32> to vector<8x128xf32>
    %576 = arith.subf %414, %575 : vector<8x128xf32>
    %577 = arith.mulf %576, %576 : vector<8x128xf32>
    %578 = arith.addf %573, %577 : vector<8x128xf32>
    %579 = arith.minimumf %537, %578 : vector<8x128xf32>
    %580 = arith.mulf %578, %27 : vector<8x128xf32>
    %581 = arith.minimumf %398, %580 : vector<8x128xf32>
    %c27_342 = arith.constant 27 : index
    %c0_343 = arith.constant 0 : index
    %c0_344 = arith.constant 0 : index
    %582 = vector.load %arg1[%c27_342, %c0_343, %c0_344] : memref<36x8x128xf32, #tpu.memory_space<vmem>>, vector<1x8x128xf32>
    %583 = vector.shape_cast %582 : vector<1x8x128xf32> to vector<8x128xf32>
    %c28_345 = arith.constant 28 : index
    %c0_346 = arith.constant 0 : index
    %c0_347 = arith.constant 0 : index
    %584 = vector.load %arg1[%c28_345, %c0_346, %c0_347] : memref<36x8x128xf32, #tpu.memory_space<vmem>>, vector<1x8x128xf32>
    %585 = vector.shape_cast %584 : vector<1x8x128xf32> to vector<8x128xf32>
    %c29_348 = arith.constant 29 : index
    %c0_349 = arith.constant 0 : index
    %c0_350 = arith.constant 0 : index
    %586 = vector.load %arg1[%c29_348, %c0_349, %c0_350] : memref<36x8x128xf32, #tpu.memory_space<vmem>>, vector<1x8x128xf32>
    %587 = vector.shape_cast %586 : vector<1x8x128xf32> to vector<8x128xf32>
    %c30_351 = arith.constant 30 : index
    %c0_352 = arith.constant 0 : index
    %c0_353 = arith.constant 0 : index
    %588 = vector.load %arg1[%c30_351, %c0_352, %c0_353] : memref<36x8x128xf32, #tpu.memory_space<vmem>>, vector<1x8x128xf32>
    %589 = vector.shape_cast %588 : vector<1x8x128xf32> to vector<8x128xf32>
    %c31_354 = arith.constant 31 : index
    %c0_355 = arith.constant 0 : index
    %c0_356 = arith.constant 0 : index
    %590 = vector.load %arg1[%c31_354, %c0_355, %c0_356] : memref<36x8x128xf32, #tpu.memory_space<vmem>>, vector<1x8x128xf32>
    %591 = vector.shape_cast %590 : vector<1x8x128xf32> to vector<8x128xf32>
    %c32 = arith.constant 32 : index
    %c0_357 = arith.constant 0 : index
    %c0_358 = arith.constant 0 : index
    %592 = vector.load %arg1[%c32, %c0_357, %c0_358] : memref<36x8x128xf32, #tpu.memory_space<vmem>>, vector<1x8x128xf32>
    %593 = vector.shape_cast %592 : vector<1x8x128xf32> to vector<8x128xf32>
    %c33 = arith.constant 33 : index
    %c0_359 = arith.constant 0 : index
    %c0_360 = arith.constant 0 : index
    %594 = vector.load %arg1[%c33, %c0_359, %c0_360] : memref<36x8x128xf32, #tpu.memory_space<vmem>>, vector<1x8x128xf32>
    %595 = vector.shape_cast %594 : vector<1x8x128xf32> to vector<8x128xf32>
    %c34 = arith.constant 34 : index
    %c0_361 = arith.constant 0 : index
    %c0_362 = arith.constant 0 : index
    %596 = vector.load %arg1[%c34, %c0_361, %c0_362] : memref<36x8x128xf32, #tpu.memory_space<vmem>>, vector<1x8x128xf32>
    %597 = vector.shape_cast %596 : vector<1x8x128xf32> to vector<8x128xf32>
    %c0_363 = arith.constant 0 : index
    %c0_364 = arith.constant 0 : index
    %c0_365 = arith.constant 0 : index
    %598 = vector.load %arg2[%c0_363, %c0_364, %c0_365] : memref<32x8x128xf32, #tpu.memory_space<vmem>>, vector<1x8x128xf32>
    %599 = vector.shape_cast %598 : vector<1x8x128xf32> to vector<8x128xf32>
    %600 = arith.subf %583, %599 : vector<8x128xf32>
    %601 = arith.mulf %600, %600 : vector<8x128xf32>
    %c1_366 = arith.constant 1 : index
    %c0_367 = arith.constant 0 : index
    %c0_368 = arith.constant 0 : index
    %602 = vector.load %arg2[%c1_366, %c0_367, %c0_368] : memref<32x8x128xf32, #tpu.memory_space<vmem>>, vector<1x8x128xf32>
    %603 = vector.shape_cast %602 : vector<1x8x128xf32> to vector<8x128xf32>
    %604 = arith.subf %585, %603 : vector<8x128xf32>
    %605 = arith.mulf %604, %604 : vector<8x128xf32>
    %606 = arith.addf %601, %605 : vector<8x128xf32>
    %c2_369 = arith.constant 2 : index
    %c0_370 = arith.constant 0 : index
    %c0_371 = arith.constant 0 : index
    %607 = vector.load %arg2[%c2_369, %c0_370, %c0_371] : memref<32x8x128xf32, #tpu.memory_space<vmem>>, vector<1x8x128xf32>
    %608 = vector.shape_cast %607 : vector<1x8x128xf32> to vector<8x128xf32>
    %609 = arith.subf %587, %608 : vector<8x128xf32>
    %610 = arith.mulf %609, %609 : vector<8x128xf32>
    %611 = arith.addf %606, %610 : vector<8x128xf32>
    %c3_372 = arith.constant 3 : index
    %c0_373 = arith.constant 0 : index
    %c0_374 = arith.constant 0 : index
    %612 = vector.load %arg2[%c3_372, %c0_373, %c0_374] : memref<32x8x128xf32, #tpu.memory_space<vmem>>, vector<1x8x128xf32>
    %613 = vector.shape_cast %612 : vector<1x8x128xf32> to vector<8x128xf32>
    %614 = arith.subf %589, %613 : vector<8x128xf32>
    %615 = arith.mulf %614, %614 : vector<8x128xf32>
    %616 = arith.addf %611, %615 : vector<8x128xf32>
    %c4_375 = arith.constant 4 : index
    %c0_376 = arith.constant 0 : index
    %c0_377 = arith.constant 0 : index
    %617 = vector.load %arg2[%c4_375, %c0_376, %c0_377] : memref<32x8x128xf32, #tpu.memory_space<vmem>>, vector<1x8x128xf32>
    %618 = vector.shape_cast %617 : vector<1x8x128xf32> to vector<8x128xf32>
    %619 = arith.subf %591, %618 : vector<8x128xf32>
    %620 = arith.mulf %619, %619 : vector<8x128xf32>
    %621 = arith.addf %616, %620 : vector<8x128xf32>
    %c5_378 = arith.constant 5 : index
    %c0_379 = arith.constant 0 : index
    %c0_380 = arith.constant 0 : index
    %622 = vector.load %arg2[%c5_378, %c0_379, %c0_380] : memref<32x8x128xf32, #tpu.memory_space<vmem>>, vector<1x8x128xf32>
    %623 = vector.shape_cast %622 : vector<1x8x128xf32> to vector<8x128xf32>
    %624 = arith.subf %593, %623 : vector<8x128xf32>
    %625 = arith.mulf %624, %624 : vector<8x128xf32>
    %626 = arith.addf %621, %625 : vector<8x128xf32>
    %c6_381 = arith.constant 6 : index
    %c0_382 = arith.constant 0 : index
    %c0_383 = arith.constant 0 : index
    %627 = vector.load %arg2[%c6_381, %c0_382, %c0_383] : memref<32x8x128xf32, #tpu.memory_space<vmem>>, vector<1x8x128xf32>
    %628 = vector.shape_cast %627 : vector<1x8x128xf32> to vector<8x128xf32>
    %629 = arith.subf %595, %628 : vector<8x128xf32>
    %630 = arith.mulf %629, %629 : vector<8x128xf32>
    %631 = arith.addf %626, %630 : vector<8x128xf32>
    %c7_384 = arith.constant 7 : index
    %c0_385 = arith.constant 0 : index
    %c0_386 = arith.constant 0 : index
    %632 = vector.load %arg2[%c7_384, %c0_385, %c0_386] : memref<32x8x128xf32, #tpu.memory_space<vmem>>, vector<1x8x128xf32>
    %633 = vector.shape_cast %632 : vector<1x8x128xf32> to vector<8x128xf32>
    %634 = arith.subf %597, %633 : vector<8x128xf32>
    %635 = arith.mulf %634, %634 : vector<8x128xf32>
    %636 = arith.addf %631, %635 : vector<8x128xf32>
    %637 = arith.mulf %636, %36 : vector<8x128xf32>
    %638 = arith.minimumf %455, %637 : vector<8x128xf32>
    %c8_387 = arith.constant 8 : index
    %c0_388 = arith.constant 0 : index
    %c0_389 = arith.constant 0 : index
    %639 = vector.load %arg2[%c8_387, %c0_388, %c0_389] : memref<32x8x128xf32, #tpu.memory_space<vmem>>, vector<1x8x128xf32>
    %640 = vector.shape_cast %639 : vector<1x8x128xf32> to vector<8x128xf32>
    %641 = arith.subf %583, %640 : vector<8x128xf32>
    %642 = arith.mulf %641, %641 : vector<8x128xf32>
    %c9_390 = arith.constant 9 : index
    %c0_391 = arith.constant 0 : index
    %c0_392 = arith.constant 0 : index
    %643 = vector.load %arg2[%c9_390, %c0_391, %c0_392] : memref<32x8x128xf32, #tpu.memory_space<vmem>>, vector<1x8x128xf32>
    %644 = vector.shape_cast %643 : vector<1x8x128xf32> to vector<8x128xf32>
    %645 = arith.subf %585, %644 : vector<8x128xf32>
    %646 = arith.mulf %645, %645 : vector<8x128xf32>
    %647 = arith.addf %642, %646 : vector<8x128xf32>
    %c10_393 = arith.constant 10 : index
    %c0_394 = arith.constant 0 : index
    %c0_395 = arith.constant 0 : index
    %648 = vector.load %arg2[%c10_393, %c0_394, %c0_395] : memref<32x8x128xf32, #tpu.memory_space<vmem>>, vector<1x8x128xf32>
    %649 = vector.shape_cast %648 : vector<1x8x128xf32> to vector<8x128xf32>
    %650 = arith.subf %587, %649 : vector<8x128xf32>
    %651 = arith.mulf %650, %650 : vector<8x128xf32>
    %652 = arith.addf %647, %651 : vector<8x128xf32>
    %c11_396 = arith.constant 11 : index
    %c0_397 = arith.constant 0 : index
    %c0_398 = arith.constant 0 : index
    %653 = vector.load %arg2[%c11_396, %c0_397, %c0_398] : memref<32x8x128xf32, #tpu.memory_space<vmem>>, vector<1x8x128xf32>
    %654 = vector.shape_cast %653 : vector<1x8x128xf32> to vector<8x128xf32>
    %655 = arith.subf %589, %654 : vector<8x128xf32>
    %656 = arith.mulf %655, %655 : vector<8x128xf32>
    %657 = arith.addf %652, %656 : vector<8x128xf32>
    %c12_399 = arith.constant 12 : index
    %c0_400 = arith.constant 0 : index
    %c0_401 = arith.constant 0 : index
    %658 = vector.load %arg2[%c12_399, %c0_400, %c0_401] : memref<32x8x128xf32, #tpu.memory_space<vmem>>, vector<1x8x128xf32>
    %659 = vector.shape_cast %658 : vector<1x8x128xf32> to vector<8x128xf32>
    %660 = arith.subf %591, %659 : vector<8x128xf32>
    %661 = arith.mulf %660, %660 : vector<8x128xf32>
    %662 = arith.addf %657, %661 : vector<8x128xf32>
    %c13_402 = arith.constant 13 : index
    %c0_403 = arith.constant 0 : index
    %c0_404 = arith.constant 0 : index
    %663 = vector.load %arg2[%c13_402, %c0_403, %c0_404] : memref<32x8x128xf32, #tpu.memory_space<vmem>>, vector<1x8x128xf32>
    %664 = vector.shape_cast %663 : vector<1x8x128xf32> to vector<8x128xf32>
    %665 = arith.subf %593, %664 : vector<8x128xf32>
    %666 = arith.mulf %665, %665 : vector<8x128xf32>
    %667 = arith.addf %662, %666 : vector<8x128xf32>
    %c14_405 = arith.constant 14 : index
    %c0_406 = arith.constant 0 : index
    %c0_407 = arith.constant 0 : index
    %668 = vector.load %arg2[%c14_405, %c0_406, %c0_407] : memref<32x8x128xf32, #tpu.memory_space<vmem>>, vector<1x8x128xf32>
    %669 = vector.shape_cast %668 : vector<1x8x128xf32> to vector<8x128xf32>
    %670 = arith.subf %595, %669 : vector<8x128xf32>
    %671 = arith.mulf %670, %670 : vector<8x128xf32>
    %672 = arith.addf %667, %671 : vector<8x128xf32>
    %c15_408 = arith.constant 15 : index
    %c0_409 = arith.constant 0 : index
    %c0_410 = arith.constant 0 : index
    %673 = vector.load %arg2[%c15_408, %c0_409, %c0_410] : memref<32x8x128xf32, #tpu.memory_space<vmem>>, vector<1x8x128xf32>
    %674 = vector.shape_cast %673 : vector<1x8x128xf32> to vector<8x128xf32>
    %675 = arith.subf %597, %674 : vector<8x128xf32>
    %676 = arith.mulf %675, %675 : vector<8x128xf32>
    %677 = arith.addf %672, %676 : vector<8x128xf32>
    %678 = arith.minimumf %636, %677 : vector<8x128xf32>
    %679 = arith.mulf %677, %36 : vector<8x128xf32>
    %680 = arith.minimumf %497, %679 : vector<8x128xf32>
    %c16_411 = arith.constant 16 : index
    %c0_412 = arith.constant 0 : index
    %c0_413 = arith.constant 0 : index
    %681 = vector.load %arg2[%c16_411, %c0_412, %c0_413] : memref<32x8x128xf32, #tpu.memory_space<vmem>>, vector<1x8x128xf32>
    %682 = vector.shape_cast %681 : vector<1x8x128xf32> to vector<8x128xf32>
    %683 = arith.subf %583, %682 : vector<8x128xf32>
    %684 = arith.mulf %683, %683 : vector<8x128xf32>
    %c17_414 = arith.constant 17 : index
    %c0_415 = arith.constant 0 : index
    %c0_416 = arith.constant 0 : index
    %685 = vector.load %arg2[%c17_414, %c0_415, %c0_416] : memref<32x8x128xf32, #tpu.memory_space<vmem>>, vector<1x8x128xf32>
    %686 = vector.shape_cast %685 : vector<1x8x128xf32> to vector<8x128xf32>
    %687 = arith.subf %585, %686 : vector<8x128xf32>
    %688 = arith.mulf %687, %687 : vector<8x128xf32>
    %689 = arith.addf %684, %688 : vector<8x128xf32>
    %c18_417 = arith.constant 18 : index
    %c0_418 = arith.constant 0 : index
    %c0_419 = arith.constant 0 : index
    %690 = vector.load %arg2[%c18_417, %c0_418, %c0_419] : memref<32x8x128xf32, #tpu.memory_space<vmem>>, vector<1x8x128xf32>
    %691 = vector.shape_cast %690 : vector<1x8x128xf32> to vector<8x128xf32>
    %692 = arith.subf %587, %691 : vector<8x128xf32>
    %693 = arith.mulf %692, %692 : vector<8x128xf32>
    %694 = arith.addf %689, %693 : vector<8x128xf32>
    %c19_420 = arith.constant 19 : index
    %c0_421 = arith.constant 0 : index
    %c0_422 = arith.constant 0 : index
    %695 = vector.load %arg2[%c19_420, %c0_421, %c0_422] : memref<32x8x128xf32, #tpu.memory_space<vmem>>, vector<1x8x128xf32>
    %696 = vector.shape_cast %695 : vector<1x8x128xf32> to vector<8x128xf32>
    %697 = arith.subf %589, %696 : vector<8x128xf32>
    %698 = arith.mulf %697, %697 : vector<8x128xf32>
    %699 = arith.addf %694, %698 : vector<8x128xf32>
    %c20_423 = arith.constant 20 : index
    %c0_424 = arith.constant 0 : index
    %c0_425 = arith.constant 0 : index
    %700 = vector.load %arg2[%c20_423, %c0_424, %c0_425] : memref<32x8x128xf32, #tpu.memory_space<vmem>>, vector<1x8x128xf32>
    %701 = vector.shape_cast %700 : vector<1x8x128xf32> to vector<8x128xf32>
    %702 = arith.subf %591, %701 : vector<8x128xf32>
    %703 = arith.mulf %702, %702 : vector<8x128xf32>
    %704 = arith.addf %699, %703 : vector<8x128xf32>
    %c21_426 = arith.constant 21 : index
    %c0_427 = arith.constant 0 : index
    %c0_428 = arith.constant 0 : index
    %705 = vector.load %arg2[%c21_426, %c0_427, %c0_428] : memref<32x8x128xf32, #tpu.memory_space<vmem>>, vector<1x8x128xf32>
    %706 = vector.shape_cast %705 : vector<1x8x128xf32> to vector<8x128xf32>
    %707 = arith.subf %593, %706 : vector<8x128xf32>
    %708 = arith.mulf %707, %707 : vector<8x128xf32>
    %709 = arith.addf %704, %708 : vector<8x128xf32>
    %c22_429 = arith.constant 22 : index
    %c0_430 = arith.constant 0 : index
    %c0_431 = arith.constant 0 : index
    %710 = vector.load %arg2[%c22_429, %c0_430, %c0_431] : memref<32x8x128xf32, #tpu.memory_space<vmem>>, vector<1x8x128xf32>
    %711 = vector.shape_cast %710 : vector<1x8x128xf32> to vector<8x128xf32>
    %712 = arith.subf %595, %711 : vector<8x128xf32>
    %713 = arith.mulf %712, %712 : vector<8x128xf32>
    %714 = arith.addf %709, %713 : vector<8x128xf32>
    %c23_432 = arith.constant 23 : index
    %c0_433 = arith.constant 0 : index
    %c0_434 = arith.constant 0 : index
    %715 = vector.load %arg2[%c23_432, %c0_433, %c0_434] : memref<32x8x128xf32, #tpu.memory_space<vmem>>, vector<1x8x128xf32>
    %716 = vector.shape_cast %715 : vector<1x8x128xf32> to vector<8x128xf32>
    %717 = arith.subf %597, %716 : vector<8x128xf32>
    %718 = arith.mulf %717, %717 : vector<8x128xf32>
    %719 = arith.addf %714, %718 : vector<8x128xf32>
    %720 = arith.minimumf %678, %719 : vector<8x128xf32>
    %721 = arith.mulf %719, %36 : vector<8x128xf32>
    %722 = arith.minimumf %539, %721 : vector<8x128xf32>
    %c24_435 = arith.constant 24 : index
    %c0_436 = arith.constant 0 : index
    %c0_437 = arith.constant 0 : index
    %723 = vector.load %arg2[%c24_435, %c0_436, %c0_437] : memref<32x8x128xf32, #tpu.memory_space<vmem>>, vector<1x8x128xf32>
    %724 = vector.shape_cast %723 : vector<1x8x128xf32> to vector<8x128xf32>
    %725 = arith.subf %583, %724 : vector<8x128xf32>
    %726 = arith.mulf %725, %725 : vector<8x128xf32>
    %c25_438 = arith.constant 25 : index
    %c0_439 = arith.constant 0 : index
    %c0_440 = arith.constant 0 : index
    %727 = vector.load %arg2[%c25_438, %c0_439, %c0_440] : memref<32x8x128xf32, #tpu.memory_space<vmem>>, vector<1x8x128xf32>
    %728 = vector.shape_cast %727 : vector<1x8x128xf32> to vector<8x128xf32>
    %729 = arith.subf %585, %728 : vector<8x128xf32>
    %730 = arith.mulf %729, %729 : vector<8x128xf32>
    %731 = arith.addf %726, %730 : vector<8x128xf32>
    %c26_441 = arith.constant 26 : index
    %c0_442 = arith.constant 0 : index
    %c0_443 = arith.constant 0 : index
    %732 = vector.load %arg2[%c26_441, %c0_442, %c0_443] : memref<32x8x128xf32, #tpu.memory_space<vmem>>, vector<1x8x128xf32>
    %733 = vector.shape_cast %732 : vector<1x8x128xf32> to vector<8x128xf32>
    %734 = arith.subf %587, %733 : vector<8x128xf32>
    %735 = arith.mulf %734, %734 : vector<8x128xf32>
    %736 = arith.addf %731, %735 : vector<8x128xf32>
    %c27_444 = arith.constant 27 : index
    %c0_445 = arith.constant 0 : index
    %c0_446 = arith.constant 0 : index
    %737 = vector.load %arg2[%c27_444, %c0_445, %c0_446] : memref<32x8x128xf32, #tpu.memory_space<vmem>>, vector<1x8x128xf32>
    %738 = vector.shape_cast %737 : vector<1x8x128xf32> to vector<8x128xf32>
    %739 = arith.subf %589, %738 : vector<8x128xf32>
    %740 = arith.mulf %739, %739 : vector<8x128xf32>
    %741 = arith.addf %736, %740 : vector<8x128xf32>
    %c28_447 = arith.constant 28 : index
    %c0_448 = arith.constant 0 : index
    %c0_449 = arith.constant 0 : index
    %742 = vector.load %arg2[%c28_447, %c0_448, %c0_449] : memref<32x8x128xf32, #tpu.memory_space<vmem>>, vector<1x8x128xf32>
    %743 = vector.shape_cast %742 : vector<1x8x128xf32> to vector<8x128xf32>
    %744 = arith.subf %591, %743 : vector<8x128xf32>
    %745 = arith.mulf %744, %744 : vector<8x128xf32>
    %746 = arith.addf %741, %745 : vector<8x128xf32>
    %c29_450 = arith.constant 29 : index
    %c0_451 = arith.constant 0 : index
    %c0_452 = arith.constant 0 : index
    %747 = vector.load %arg2[%c29_450, %c0_451, %c0_452] : memref<32x8x128xf32, #tpu.memory_space<vmem>>, vector<1x8x128xf32>
    %748 = vector.shape_cast %747 : vector<1x8x128xf32> to vector<8x128xf32>
    %749 = arith.subf %593, %748 : vector<8x128xf32>
    %750 = arith.mulf %749, %749 : vector<8x128xf32>
    %751 = arith.addf %746, %750 : vector<8x128xf32>
    %c30_453 = arith.constant 30 : index
    %c0_454 = arith.constant 0 : index
    %c0_455 = arith.constant 0 : index
    %752 = vector.load %arg2[%c30_453, %c0_454, %c0_455] : memref<32x8x128xf32, #tpu.memory_space<vmem>>, vector<1x8x128xf32>
    %753 = vector.shape_cast %752 : vector<1x8x128xf32> to vector<8x128xf32>
    %754 = arith.subf %595, %753 : vector<8x128xf32>
    %755 = arith.mulf %754, %754 : vector<8x128xf32>
    %756 = arith.addf %751, %755 : vector<8x128xf32>
    %c31_456 = arith.constant 31 : index
    %c0_457 = arith.constant 0 : index
    %c0_458 = arith.constant 0 : index
    %757 = vector.load %arg2[%c31_456, %c0_457, %c0_458] : memref<32x8x128xf32, #tpu.memory_space<vmem>>, vector<1x8x128xf32>
    %758 = vector.shape_cast %757 : vector<1x8x128xf32> to vector<8x128xf32>
    %759 = arith.subf %597, %758 : vector<8x128xf32>
    %760 = arith.mulf %759, %759 : vector<8x128xf32>
    %761 = arith.addf %756, %760 : vector<8x128xf32>
    %762 = arith.minimumf %720, %761 : vector<8x128xf32>
    %763 = arith.mulf %761, %36 : vector<8x128xf32>
    %764 = arith.minimumf %581, %763 : vector<8x128xf32>
    %765 = math.sqrt %214 : vector<8x128xf32>
    %766 = arith.mulf %3, %765 : vector<8x128xf32>
    %767 = math.sqrt %396 : vector<8x128xf32>
    %768 = arith.mulf %12, %767 : vector<8x128xf32>
    %769 = arith.addf %766, %768 : vector<8x128xf32>
    %770 = math.sqrt %579 : vector<8x128xf32>
    %771 = arith.mulf %21, %770 : vector<8x128xf32>
    %772 = arith.addf %769, %771 : vector<8x128xf32>
    %773 = math.sqrt %762 : vector<8x128xf32>
    %774 = arith.mulf %30, %773 : vector<8x128xf32>
    %775 = arith.addf %772, %774 : vector<8x128xf32>
    %776 = math.sqrt %638 : vector<8x128xf32>
    %777 = arith.addf %775, %776 : vector<8x128xf32>
    %778 = math.sqrt %680 : vector<8x128xf32>
    %779 = arith.addf %777, %778 : vector<8x128xf32>
    %780 = math.sqrt %722 : vector<8x128xf32>
    %781 = arith.addf %779, %780 : vector<8x128xf32>
    %782 = math.sqrt %764 : vector<8x128xf32>
    %783 = arith.addf %781, %782 : vector<8x128xf32>
    %c0_i32 = arith.constant 0 : i32
    %784 = arith.addi %0, %c0_i32 : i32
    %c128_i32 = arith.constant 128 : i32
    %785 = arith.muli %784, %c128_i32 : i32
    %786 = tpu.iota {dimensions = array<i32: 0>} : vector<8x128xi32>
    %c128_i32_459 = arith.constant 128 : i32
    %787 = vector.broadcast %c128_i32_459 : i32 to vector<8x128xi32>
    %788 = arith.muli %786, %787 : vector<8x128xi32>
    %789 = vector.broadcast %785 : i32 to vector<8x128xi32>
    %790 = arith.addi %789, %788 : vector<8x128xi32>
    %791 = tpu.iota {dimensions = array<i32: 1>} : vector<8x128xi32>
    %792 = arith.addi %790, %791 : vector<8x128xi32>
    %c16_i32 = arith.constant 16 : i32
    %793 = vector.broadcast %c16_i32 : i32 to vector<8x128xi32>
    %794 = arith.cmpi slt, %792, %793 : vector<8x128xi32>
    %cst_460 = arith.constant 0.000000e+00 : f32
    %795 = vector.broadcast %cst_460 : f32 to vector<8x128xf32>
    %796 = arith.select %794, %783, %795 : vector<8x128xi1>, vector<8x128xf32>
    %c0_461 = arith.constant 0 : index
    %c0_462 = arith.constant 0 : index
    %797 = vector.load %arg3[%c0_461, %c0_462] : memref<8x128xf32, #tpu.memory_space<vmem>>, vector<8x128xf32>
    tpu.vector_store %arg3[%c0_461, %c0_462], %796 {strides = array<i32>} : memref<8x128xf32, #tpu.memory_space<vmem>>, vector<8x128xf32>,
    return
  }
  func.func @transform_0(%arg0: i32) -> (i32, i32, i32) {
    %c0_i32 = arith.constant 0 : i32
    %c0_i32_0 = arith.constant 0 : i32
    %c0_i32_1 = arith.constant 0 : i32
    return %c0_i32, %arg0, %c0_i32_0 : i32, i32, i32
  }
  func.func @transform_1(%arg0: i32) -> (i32, i32, i32) {
    %c0_i32 = arith.constant 0 : i32
    %c0_i32_0 = arith.constant 0 : i32
    %c0_i32_1 = arith.constant 0 : i32
    return %c0_i32, %arg0, %c0_i32_0 : i32, i32, i32
  }
  func.func @transform_2(%arg0: i32) -> (i32, i32) {
    %c0_i32 = arith.constant 0 : i32
    %c0_i32_0 = arith.constant 0 : i32
    return %arg0, %c0_i32 : i32, i32
  }
}

</mosaic_0001>

<bundles_post_ra>
// kernel: tpu_custom_call.1
= control target key start
LH: loop header
LB: loop body
LE: loop exit
PB: predicated region body
PF: predicated region fallthrough
CT: control target
= control target key end

     0   :  { %7 = vsyncpa [#allocation3], 0  ;;  %s1397_s0 = inlined_call_operand.hbm [shape: f32[36,8,128], index: 0, kind: input, shape index: {}]   ;;  %s1398_s1 = inlined_call_operand.hbm [shape: f32[32,8,128], index: 1, kind: input, shape index: {}]   ;;  %s1399_s2 = inlined_call_operand.hbm [shape: f32[8,128], index: 2, kind: output, shape index: {}]  }
   0x1   :  { %8 = vsyncpa [#allocation6], 0 }
   0x2   :  { %9 = vsyncpa [#allocation4], 0  ;;  %s802_s9 = smov [#allocation2]   ;;  %s730_s13 = scalar_lea.hbm %s1397_s0, 4608 }
   0x3   :  { %s15_s10 = sshll.u32 %s802_s9, 4  ;;  %p731_p0 = scmp.ne.s32.totalorder %s1397_s0, %s730_s13  ;;  %s16_s10 = int_to_ptr.vmem [resolvable:$true] %s15_s10 }
   0x4   :  { %p734_p1 = scmp.lt.u32.totalorder %s730_s13, %s1397_s0 }
   0x6   :  { %p736_p2 = pnand %p734_p1, %p731_p0 }
   0x8   :  { %739 = shalt.err (!%p736_p2)
}
   0x9   :  { %s740_s18 = scalar_lea.vmem %s16_s10, 4608  ;;  %p745_p4 = scmp.lt.s32.totalorder %s16_s10, %s16_s10 }
   0xa   :  { %p741_p3 = scmp.ne.s32.totalorder %s16_s10, %s740_s18  ;;  %p746_p5 = scmp.lt.s32.totalorder %s740_s18, %s740_s18 }
   0xc   :  { %p747_p6 = por %p746_p5, %p745_p4 }
   0xe   :  { %p748_p7 = pnand %p747_p6, %p741_p3 }
  0x10   :  { %751 = shalt.err (!%p748_p7)
}
  0x11   :  { %s803_s19 = smov 128   ;;  %s804_s20 = smov 8  }
  0x12   :  { %21 = dma.hbm_to_vmem [thread:$0]  %s1397_s0, 4608, %s16_s10, [#allocation3], %s803_s19, %s803_s19, %s804_s20  }
  0x13   :  { %s805_s23 = smov [#allocation5]   ;;  %s752_s27 = scalar_lea.hbm %s1398_s1, 4096 }
  0x14   :  { %s27_s24 = sshll.u32 %s805_s23, 4  ;;  %p753_p8 = scmp.ne.s32.totalorder %s1398_s1, %s752_s27  ;;  %s28_s24 = int_to_ptr.vmem [resolvable:$true] %s27_s24 }
  0x15   :  { %p756_p9 = scmp.lt.u32.totalorder %s752_s27, %s1398_s1 }
  0x17   :  { %p758_p10 = pnand %p756_p9, %p753_p8 }
  0x19   :  { %761 = shalt.err (!%p758_p10)
}
  0x1a   :  { %s762_s4 = scalar_lea.vmem %s28_s24, 4096  ;;  %p767_p12 = scmp.lt.s32.totalorder %s28_s24, %s28_s24 }
  0x1b   :  { %p763_p11 = scmp.ne.s32.totalorder %s28_s24, %s762_s4  ;;  %p768_p13 = scmp.lt.s32.totalorder %s762_s4, %s762_s4 }
  0x1d   :  { %p769_p0 = por %p768_p13, %p767_p12 }
  0x1f   :  { %p770_p1 = pnand %p769_p0, %p763_p11 }
  0x21   :  { %773 = shalt.err (!%p770_p1)
}
  0x22   :  { %33 = dma.hbm_to_vmem [thread:$0]  %s1398_s1, 4096, %s28_s24, [#allocation6], %s803_s19, %s803_s19, %s804_s20  }
  0x23   :  { %796 = dma.done.wait [#allocation3], 4608  }
  0x24   :  { %797 = vsyncadd [#allocation3], 4294962688 }
  0x25   :  { %798 = dma.done.wait [#allocation6], 4096  }
  0x26   :  { %799 = vsyncadd [#allocation6], 4294963200  ;;  %v41_v0 = vld [vmem:[#allocation2 + $0x40] sm:$0xff]  ;;  %v49_v1 = vld [vmem:[#allocation2 + $0x88] sm:$0xff]  ;;  %s806_s1 = smov [#allocation7]  }
  0x27   :  { %v57_v2 = vld [vmem:[#allocation2 + $0xd0] sm:$0xff]  ;;  %v846_v3 = vmul.f32 %v41_v0, %v41_v0  ;;  %v848_v4 = vmul.f32 %v49_v1, %v49_v1  ;;  %v65_v6 = vld [vmem:[#allocation2 + $0x118] sm:$0xff]  ;;  %v854_v8 = vld [vmem:[#allocation2] sm:$0xff]  ;;  %s691_s6 = sshll.u32 %s806_s1, 4  ;;  %s692_s6 = int_to_ptr.vmem [resolvable:$true] %s691_s6 }
  0x28   :  { %v850_v5 = vmul.f32 %v57_v2, %v57_v2  ;;  %v852_v7 = vmul.f32 %v65_v6, %v65_v6  ;;  %v856_v9 = vld [vmem:[#allocation2 + $0x8] sm:$0xff]  ;;  %v858_v10 = vld [vmem:[#allocation2 + $0x10] sm:$0xff]  ;;  %v861_v11 = vld [vmem:[#allocation2 + $0x18] sm:$0xff]  ;;  %s774_s7 = scalar_lea.vmem %s692_s6, 128  ;;  %p779_p3 = scmp.lt.s32.totalorder %s692_s6, %s692_s6 }
  0x29   :  { %1433 = vst [vmem:[#allocation11_spill] sm:$0xff] %v846_v3  ;;  %1434 = vst [vmem:[#allocation12_spill] sm:$0xff] %v848_v4  ;;  %706 = vrcp.f32 %v846_v3  ;;  %v864_v12 = vld [vmem:[#allocation5] sm:$0xff]  ;;  %v866_v13 = vld [vmem:[#allocation5 + $0x8] sm:$0xff]  ;;  %p775_p2 = scmp.ne.s32.totalorder %s692_s6, %s774_s7  ;;  %p780_p4 = scmp.lt.s32.totalorder %s774_s7, %s774_s7 }
  0x2a   :  { %1435 = vst [vmem:[#allocation13_spill] sm:$0xff] %v850_v5  ;;  %1436 = vst [vmem:[#allocation14_spill] sm:$0xff] %v852_v7  ;;  %708 = vrcp.f32 %v848_v4  ;;  %v868_v14 = vld [vmem:[#allocation5 + $0x10] sm:$0xff]  ;;  %v871_v15 = vld [vmem:[#allocation2 + $0x20] sm:$0xff]  ;;  %v88_v16 = vsub.f32 %v854_v8, %v864_v12  ;;  %v92_v17 = vsub.f32 %v856_v9, %v866_v13 }
  0x2b   :  { %710 = vrcp.f32 %v850_v5  ;;  %v97_v18 = vsub.f32 %v858_v10, %v868_v14  ;;  %v879_v19 = vld [vmem:[#allocation5 + $0x18] sm:$0xff]  ;;  %v881_v20 = vld [vmem:[#allocation5 + $0x20] sm:$0xff]  ;;  %v888_v26 = vld [vmem:[#allocation5 + $0x48] sm:$0xff]  ;;  %p781_p5 = por %p780_p4, %p779_p3 }
  0x2c   :  { %1437 = vst [vmem:[#allocation15_spill] sm:$0xff] %v879_v19  ;;  %1438 = vst [vmem:[#allocation16_spill] sm:$0xff] %v881_v20  ;;  %712 = vrcp.f32 %v852_v7  ;;  %v102_v21 = vsub.f32 %v861_v11, %v879_v19  ;;  %v886_v22 = vld [vmem:[#allocation5 + $0x40] sm:$0xff]  ;;  %v89_v23 = vmul.f32 %v88_v16, %v88_v16  ;;  %v93_v24 = vmul.f32 %v92_v17, %v92_v17  ;;  %v890_v27 = vld [vmem:[#allocation5 + $0x50] sm:$0xff] }
  0x2d   :  { %1439 = vst [vmem:[#allocation17_spill] sm:$0xff] %v886_v22  ;;  %v98_v25 = vmul.f32 %v97_v18, %v97_v18  ;;  %1440 = vst [vmem:[#allocation18_spill] sm:$0xff] %v888_v26  ;;  %v892_v28 = vld [vmem:[#allocation5 + $0x58] sm:$0xff]  ;;  %v107_v29 = vsub.f32 %v871_v15, %v881_v20  ;;  %v896_v30 = vld [vmem:[#allocation5 + $0x60] sm:$0xff]  ;;  %v128_v35 = vsub.f32 %v854_v8, %v886_v22  ;;  %p782_p6 = pnand %p781_p5, %p775_p2 }
  0x2e   :  { %1441 = vst [vmem:[#allocation19_spill] sm:$0xff] %v890_v27  ;;  %1442 = vst [vmem:[#allocation20_spill] sm:$0xff] %v892_v28  ;;  %v898_v31 = vld [vmem:[#allocation2 + $0x28] sm:$0xff]  ;;  %v94_v32 = vadd.f32 %v93_v24, %v89_v23  ;;  %v103_v33 = vmul.f32 %v102_v21, %v102_v21  ;;  %v132_v36 = vsub.f32 %v856_v9, %v888_v26  ;;  %v914_v44 = vld [vmem:[#allocation5 + $0x80] sm:$0xff] }
  0x2f   :  { %v900_v34 = vld [vmem:[#allocation5 + $0x28] sm:$0xff]  ;;  %v137_v37 = vsub.f32 %v858_v10, %v890_v27  ;;  %v142_v38 = vsub.f32 %v861_v11, %v892_v28  ;;  %v129_v40 = vmul.f32 %v128_v35, %v128_v35  ;;  %v147_v42 = vsub.f32 %v871_v15, %v896_v30  ;;  %1444 = vst [vmem:[#allocation22_spill] sm:$0xff] %v914_v44  ;;  %v918_v46 = vld [vmem:[#allocation2 + $0x30] sm:$0xff]  ;;  %v938_v16 = vld [vmem:[#allocation2 + $0x38] sm:$0xff] }
  0x30   :  { %1443 = vst [vmem:[#allocation21_spill] sm:$0xff] %v900_v34  ;;  %v99_v39 = vadd.f32 %v98_v25, %v94_v32  ;;  %v133_v41 = vmul.f32 %v132_v36, %v132_v36  ;;  %v912_v43 = vld [vmem:[#allocation5 + $0x68] sm:$0xff]  ;;  %v112_v47 = vsub.f32 %v898_v31, %v900_v34  ;;  %v922_v48 = vld [vmem:[#allocation5 + $0x30] sm:$0xff]  ;;  %v108_v52 = vmul.f32 %v107_v29, %v107_v29  ;;  %v940_v18 = vld [vmem:[#allocation5 + $0x38] sm:$0xff] }
  0x31   :  { %v916_v45 = vld [vmem:[#allocation5 + $0x88] sm:$0xff]  ;;  %1446 = vst [vmem:[#allocation24_spill] sm:$0xff] %v922_v48  ;;  %v138_v49 = vmul.f32 %v137_v37, %v137_v37  ;;  %v143_v54 = vmul.f32 %v142_v38, %v142_v38  ;;  %v152_v56 = vsub.f32 %v898_v31, %v912_v43  ;;  %v926_v57 = vld [vmem:[#allocation5 + $0x70] sm:$0xff]  ;;  %v169_v58 = vsub.f32 %v854_v8, %v914_v44  ;;  %v947_v35 = vld [vmem:[#allocation5 + $0x98] sm:$0xff] }
  0x32   :  { %1445 = vst [vmem:[#allocation23_spill] sm:$0xff] %v916_v45  ;;  %v104_v51 = vadd.f32 %v103_v33, %v99_v39  ;;  %v134_v53 = vadd.f32 %v133_v41, %v129_v40  ;;  %1447 = vst [vmem:[#allocation25_spill] sm:$0xff] %v926_v57  ;;  %v173_v59 = vsub.f32 %v856_v9, %v916_v45  ;;  %v935_v1 = vld [vmem:[#allocation5 + $0x90] sm:$0xff]  ;;  %v945_v33 = vld [vmem:[#allocation5 + $0x78] sm:$0xff] }
  0x33   :  { %v707_v50 = vpop.eup %706  ;;  %v117_v62 = vsub.f32 %v918_v46, %v922_v48  ;;  %v148_v0 = vmul.f32 %v147_v42, %v147_v42  ;;  %1448 = vst [vmem:[#allocation26_spill] sm:$0xff] %v935_v1  ;;  %v113_v17 = vmul.f32 %v112_v47, %v112_v47  ;;  %v170_v21 = vmul.f32 %v169_v58, %v169_v58  ;;  %v954_v47 = vld [vmem:[#allocation5 + $0xa0] sm:$0xff] }
  0x34   :  { %v709_v55 = vpop.eup %708  ;;  %v44_v61 = vmul.f32 %v707_v50, %v846_v3  ;;  %v139_v63 = vadd.f32 %v138_v49, %v134_v53  ;;  %v174_v23 = vmul.f32 %v173_v59, %v173_v59  ;;  %v109_v25 = vadd.f32 %v108_v52, %v104_v51  ;;  %1449 = vst [vmem:[#allocation27_spill] sm:$0xff] %v954_v47 }
  0x35   :  { %v711_v60 = vpop.eup %710  ;;  %v52_v6 = vmul.f32 %v709_v55, %v848_v4  ;;  %v157_v32 = vsub.f32 %v918_v46, %v926_v57  ;;  %v153_v36 = vmul.f32 %v152_v56, %v152_v56  ;;  %v178_v38 = vsub.f32 %v858_v10, %v935_v1 }
  0x36   :  { %v713_v2 = vpop.eup %712  ;;  %v60_v24 = vmul.f32 %v711_v60, %v850_v5  ;;  %v144_v29 = vadd.f32 %v143_v54, %v139_v63  ;;  %v175_v37 = vadd.f32 %v174_v23, %v170_v21  ;;  %v45_v39 = vsub.f32 2.0, %v44_v61  ;;  %v960_v61 = vld [vmem:[#allocation5 + $0xa8] sm:$0xff]  ;;  %v968_v5 = vld [vmem:[#allocation5 + $0xd0] sm:$0xff] }
  0x37   :  { %v68_v40 = vmul.f32 %v713_v2, %v852_v7  ;;  %v122_v41 = vsub.f32 %v938_v16, %v940_v18  ;;  %v53_v49 = vsub.f32 2.0, %v52_v6  ;;  %v162_v51 = vsub.f32 %v938_v16, %v945_v33  ;;  %v964_v6 = vld [vmem:[#allocation5 + $0xc0] sm:$0xff] }
  0x38   :  { %v149_v42 = vadd.f32 %v148_v0, %v144_v29  ;;  %v179_v52 = vmul.f32 %v178_v38, %v178_v38  ;;  %v183_v53 = vsub.f32 %v861_v11, %v947_v35  ;;  %v61_v54 = vsub.f32 2.0, %v60_v24  ;;  %v966_v29 = vld [vmem:[#allocation5 + $0xc8] sm:$0xff] }
  0x39   :  { %v114_v56 = vadd.f32 %v113_v17, %v109_v25  ;;  %v118_v58 = vmul.f32 %v117_v62, %v117_v62  ;;  %v158_v59 = vmul.f32 %v157_v32, %v157_v32  ;;  %v188_v0 = vsub.f32 %v871_v15, %v954_v47 }
  0x3a   :  { %v154_v63 = vadd.f32 %v153_v36, %v149_v42  ;;  %v180_v21 = vadd.f32 %v179_v52, %v175_v37  ;;  %v184_v23 = vmul.f32 %v183_v53, %v183_v53  ;;  %v46_v38 = vmul.f32 %v707_v50, %v45_v39  ;;  %v972_v37 = vld [vmem:[#allocation5 + $0xb0] sm:$0xff]  ;;  %v978_v50 = vld [vmem:[#allocation5 + $0xd8] sm:$0xff] }
  0x3b   :  { %v69_v7 = vsub.f32 2.0, %v68_v40  ;;  %v54_v24 = vmul.f32 %v709_v55, %v53_v49  ;;  %v123_v17 = vmul.f32 %v122_v41, %v122_v41  ;;  %v163_v62 = vmul.f32 %v162_v51, %v162_v51  ;;  %v980_v41 = vld [vmem:[#allocation5 + $0xb8] sm:$0xff] }
  0x3c   :  { %v193_v25 = vsub.f32 %v898_v31, %v960_v61  ;;  %v185_v32 = vadd.f32 %v184_v23, %v180_v21  ;;  %v189_v36 = vmul.f32 %v188_v0, %v188_v0  ;;  %v210_v42 = vsub.f32 %v854_v8, %v964_v6  ;;  %v986_v0 = vld [vmem:[#allocation2 + $0x48] sm:$0xff] }
  0x3d   :  { %v214_v52 = vsub.f32 %v856_v9, %v966_v29  ;;  %v62_v39 = vmul.f32 %v711_v60, %v61_v54  ;;  %v119_v40 = vadd.f32 %v118_v58, %v114_v56  ;;  %v159_v55 = vadd.f32 %v158_v59, %v154_v63  ;;  %v994_v56 = vld [vmem:[#allocation5 + $0xe0] sm:$0xff]  ;;  %v998_v59 = vld [vmem:[#allocation2 + $0x50] sm:$0xff]  ;;  %v1000_v63 = vld [vmem:[#allocation2 + $0x58] sm:$0xff] }
  0x3e   :  { %v219_v49 = vsub.f32 %v858_v10, %v968_v5  ;;  %v984_v51 = vmul.f32 %v46_v38, %v46_v38  ;;  %v70_v53 = vmul.f32 %v713_v2, %v69_v7  ;;  %v211_v21 = vmul.f32 %v210_v42, %v210_v42 }
  0x3f   :  { %v215_v23 = vmul.f32 %v214_v52, %v214_v52  ;;  %v988_v8 = vmul.f32 %v54_v24, %v54_v24  ;;  %v198_v9 = vsub.f32 %v918_v46, %v972_v37  ;;  %v224_v54 = vsub.f32 %v861_v11, %v978_v50  ;;  %v1008_v52 = vld [vmem:[#allocation2 + $0x60] sm:$0xff] }
  0x40   :  { %v220_v60 = vmul.f32 %v219_v49, %v219_v49  ;;  %v190_v58 = vadd.f32 %v189_v36, %v185_v32  ;;  %v194_v10 = vmul.f32 %v193_v25, %v193_v25  ;;  %v203_v7 = vsub.f32 %v938_v16, %v980_v41 }
  0x41   :  { %v216_v2 = vadd.f32 %v215_v23, %v211_v21  ;;  %v1002_v38 = vmul.f32 %v62_v39, %v62_v39  ;;  %v1004_v24 = vadd.f32 %v123_v17, %v119_v40  ;;  %v1006_v42 = vadd.f32 %v163_v62, %v159_v55  ;;  %v1016_v21 = vld [vmem:[#allocation2 + $0x68] sm:$0xff]  ;;  %v1024_v39 = vld [vmem:[#allocation5 + $0xf0] sm:$0xff] }
  0x42   :  { %v265_v11 = vsub.f32 %v986_v0, %v864_v12  ;;  %v1012_v25 = vmul.f32 %v70_v53, %v70_v53  ;;  %v225_v36 = vmul.f32 %v224_v54, %v224_v54  ;;  %v229_v49 = vsub.f32 %v871_v15, %v994_v56  ;;  %v1022_v62 = vld [vmem:[#allocation5 + $0xe8] sm:$0xff]  ;;  %v1030_v54 = vld [vmem:[#allocation5 + $0xf8] sm:$0xff] }
  0x43   :  { %1450 = vst [vmem:[#allocation28_spill] sm:$0xff] %v1002_v38  ;;  %v221_v32 = vadd.f32 %v220_v60, %v216_v2  ;;  %v1020_v17 = vmul.f32 %v1004_v24, %v984_v51  ;;  %v267_v55 = vsub.f32 %v998_v59, %v866_v13  ;;  %v270_v53 = vsub.f32 %v1000_v63, %v868_v14 }
  0x44   :  { %1451 = vst [vmem:[#allocation29_spill] sm:$0xff] %v1012_v25  ;;  %v266_v40 = vmul.f32 %v265_v11, %v265_v11  ;;  %v195_v23 = vadd.f32 %v194_v10, %v190_v58  ;;  %v199_v60 = vmul.f32 %v198_v9, %v198_v9  ;;  %v204_v15 = vmul.f32 %v203_v7, %v203_v7  ;;  %v1042_v10 = vld [vmem:[#allocation2 + $0x70] sm:$0xff] }
  0x45   :  { %1452 = vst [vmem:[#allocation30_spill] sm:$0xff] %v1020_v17  ;;  %1453 = vst [vmem:[#allocation31_spill] sm:$0xff] %v1030_v54  ;;  %v273_v2 = vsub.f32 %v1008_v52, %v879_v19  ;;  %v165_v4 = vmin.f32 %v1004_v24, %v1006_v42  ;;  %v268_v3 = vmul.f32 %v267_v55, %v267_v55 }
  0x46   :  { %v271_v25 = vmul.f32 %v270_v53, %v270_v53  ;;  %v276_v11 = vsub.f32 %v1016_v21, %v881_v20  ;;  %v226_v38 = vadd.f32 %v225_v36, %v221_v32  ;;  %v230_v17 = vmul.f32 %v229_v49, %v229_v49  ;;  %v1048_v20 = vld [vmem:[#allocation2 + $0x78] sm:$0xff] }
  0x47   :  { %v234_v58 = vsub.f32 %v898_v31, %v1022_v62  ;;  %v239_v9 = vsub.f32 %v918_v46, %v1024_v39  ;;  %v244_v7 = vsub.f32 %v938_v16, %v1030_v54  ;;  %v269_v19 = vadd.f32 %v268_v3, %v266_v40  ;;  %v1058_v54 = vld [vmem:[#allocation2 + $0x80] sm:$0xff] }
  0x48   :  { %v274_v24 = vmul.f32 %v273_v2, %v273_v2  ;;  %v290_v55 = vsub.f32 %v986_v0, %v886_v22  ;;  %v200_v53 = vadd.f32 %v199_v60, %v195_v23  ;;  %v292_v32 = vsub.f32 %v998_v59, %v888_v26 }
  0x49   :  { %v295_v31 = vsub.f32 %v1000_v63, %v890_v27  ;;  %v298_v46 = vsub.f32 %v1008_v52, %v892_v28  ;;  %v272_v36 = vadd.f32 %v271_v25, %v269_v19  ;;  %v277_v49 = vmul.f32 %v276_v11, %v276_v11 }
  0x4a   :  { %v279_v3 = vsub.f32 %v1042_v10, %v900_v34  ;;  %v291_v16 = vmul.f32 %v290_v55, %v290_v55  ;;  %v231_v40 = vadd.f32 %v230_v17, %v226_v38  ;;  %v235_v2 = vmul.f32 %v234_v58, %v234_v58 }
  0x4b   :  { %v293_v23 = vmul.f32 %v292_v32, %v292_v32  ;;  %v296_v60 = vmul.f32 %v295_v31, %v295_v31  ;;  %v240_v22 = vmul.f32 %v239_v9, %v239_v9  ;;  %v275_v26 = vadd.f32 %v274_v24, %v272_v36 }
  0x4c   :  { %v282_v27 = vsub.f32 %v1048_v20, %v922_v48  ;;  %v301_v28 = vsub.f32 %v1016_v21, %v896_v30  ;;  %v299_v25 = vmul.f32 %v298_v46, %v298_v46  ;;  %v304_v11 = vsub.f32 %v1042_v10, %v912_v43 }
  0x4d   :  { %v294_v19 = vadd.f32 %v293_v23, %v291_v16  ;;  %v316_v38 = vsub.f32 %v986_v0, %v914_v44  ;;  %v205_v17 = vadd.f32 %v204_v15, %v200_v53  ;;  %v245_v58 = vmul.f32 %v244_v7, %v244_v7 }
  0x4e   :  { %v278_v9 = vadd.f32 %v277_v49, %v275_v26  ;;  %v280_v55 = vmul.f32 %v279_v3, %v279_v3  ;;  %v236_v32 = vadd.f32 %v235_v2, %v231_v40  ;;  %v285_v24 = vsub.f32 %v1058_v54, %v940_v18 }
  0x4f   :  { %v297_v31 = vadd.f32 %v296_v60, %v294_v19  ;;  %v302_v36 = vmul.f32 %v301_v28, %v301_v28  ;;  %v307_v16 = vsub.f32 %v1048_v20, %v926_v57  ;;  %v317_v46 = vmul.f32 %v316_v38, %v316_v38 }
  0x50   :  { %v318_v23 = vsub.f32 %v998_v59, %v916_v45  ;;  %v321_v44 = vsub.f32 %v1000_v63, %v935_v1  ;;  %v283_v15 = vmul.f32 %v282_v27, %v282_v27  ;;  %v305_v26 = vmul.f32 %v304_v11, %v304_v11 }
  0x51   :  { %v300_v7 = vadd.f32 %v299_v25, %v297_v31  ;;  %v324_v53 = vsub.f32 %v1008_v52, %v947_v35  ;;  %v281_v49 = vadd.f32 %v280_v55, %v278_v9  ;;  %v327_v28 = vsub.f32 %v1016_v21, %v954_v47 }
  0x52   :  { %v319_v3 = vmul.f32 %v318_v23, %v318_v23  ;;  %v322_v40 = vmul.f32 %v321_v44, %v321_v44  ;;  %v206_v2 = vmin.f32 %v165_v4, %v205_v17  ;;  %v241_v60 = vadd.f32 %v240_v22, %v236_v32 }
  0x53   :  { %v303_v19 = vadd.f32 %v302_v36, %v300_v7  ;;  %v310_v38 = vsub.f32 %v1058_v54, %v945_v33  ;;  %v308_v45 = vmul.f32 %v307_v16, %v307_v16  ;;  %v325_v27 = vmul.f32 %v324_v53, %v324_v53  ;;  %v1092_v7 = vld [vmem:[#allocation2 + $0x90] sm:$0xff] }
  0x54   :  { %v320_v1 = vadd.f32 %v319_v3, %v317_v46  ;;  %v330_v25 = vsub.f32 %v1042_v10, %v960_v61  ;;  %v342_v9 = vsub.f32 %v986_v0, %v964_v6  ;;  %v344_v44 = vsub.f32 %v998_v59, %v966_v29 }
  0x55   :  { %v306_v11 = vadd.f32 %v305_v26, %v303_v19  ;;  %v347_v4 = vsub.f32 %v1000_v63, %v968_v5  ;;  %v284_v22 = vadd.f32 %v283_v15, %v281_v49  ;;  %v286_v55 = vmul.f32 %v285_v24, %v285_v24 }
  0x56   :  { %v323_v32 = vadd.f32 %v322_v40, %v320_v1  ;;  %v328_v31 = vmul.f32 %v327_v28, %v327_v28  ;;  %v343_v36 = vmul.f32 %v342_v9, %v342_v9  ;;  %v345_v16 = vmul.f32 %v344_v44, %v344_v44  ;;  %v1104_v40 = vld [vmem:[#allocation2 + $0x98] sm:$0xff]  ;;  %v1128_v44 = vld [vmem:[#allocation2 + $0xb0] sm:$0xff] }
  0x57   :  { %v348_v46 = vmul.f32 %v347_v4, %v347_v4  ;;  %v350_v23 = vsub.f32 %v1008_v52, %v978_v50  ;;  %v246_v26 = vadd.f32 %v245_v58, %v241_v60  ;;  %v309_v0 = vadd.f32 %v308_v45, %v306_v11  ;;  %v1106_v45 = vld [vmem:[#allocation2 + $0xa0] sm:$0xff] }
  0x58   :  { %v311_v53 = vmul.f32 %v310_v38, %v310_v38  ;;  %v326_v3 = vadd.f32 %v325_v27, %v323_v32  ;;  %v1096_v59 = vmul.f32 %v1006_v42, %v984_v51  ;;  %v331_v63 = vmul.f32 %v330_v25, %v330_v25  ;;  %v1115_v38 = vld [vmem:[#allocation2 + $0xa8] sm:$0xff] }
  0x59   :  { %v333_v1 = vsub.f32 %v1048_v20, %v972_v37  ;;  %v346_v24 = vadd.f32 %v345_v16, %v343_v36  ;;  %v1100_v15 = vadd.f32 %v286_v55, %v284_v22  ;;  %v336_v52 = vsub.f32 %v1058_v54, %v980_v41  ;;  %v1457_v32 = vld [vmem:[#allocation15_spill] sm:$0xff] }
  0x5a   :  { %v329_v49 = vadd.f32 %v328_v31, %v326_v3  ;;  %v384_v58 = vsub.f32 %v1092_v7, %v864_v12  ;;  %v1111_v42 = vmul.f32 %v205_v17, %v984_v51  ;;  %v351_v60 = vmul.f32 %v350_v23, %v350_v23  ;;  %v1459_v3 = vld [vmem:[#allocation31_spill] sm:$0xff] }
  0x5b   :  { %v349_v28 = vadd.f32 %v348_v46, %v346_v24  ;;  %v353_v19 = vsub.f32 %v1016_v21, %v994_v56  ;;  %v1117_v27 = vmin.f32 %v206_v2, %v246_v26  ;;  %v1120_v25 = vmul.f32 %v246_v26, %v984_v51  ;;  %v1136_v46 = vld [vmem:[#allocation2 + $0xb8] sm:$0xff]  ;;  %v1460_v24 = vld [vmem:[#allocation16_spill] sm:$0xff] }
  0x5c   :  { %v1124_v11 = vmul.f32 %v1100_v15, %v988_v8  ;;  %v312_v9 = vadd.f32 %v311_v53, %v309_v0  ;;  %v356_v17 = vsub.f32 %v1042_v10, %v1022_v62  ;;  %v385_v4 = vmul.f32 %v384_v58, %v384_v58  ;;  %v1462_v0 = vld [vmem:[#allocation18_spill] sm:$0xff] }
  0x5d   :  { %1454 = vst [vmem:[#allocation32_spill] sm:$0xff] %v1117_v27  ;;  %1455 = vst [vmem:[#allocation33_spill] sm:$0xff] %v1120_v25  ;;  %v386_v21 = vsub.f32 %v1104_v40, %v866_v13  ;;  %v389_v2 = vsub.f32 %v1106_v45, %v868_v14  ;;  %v332_v22 = vadd.f32 %v331_v63, %v329_v49  ;;  %v1463_v27 = vld [vmem:[#allocation19_spill] sm:$0xff] }
  0x5e   :  { %1456 = vst [vmem:[#allocation34_spill] sm:$0xff] %v1124_v11  ;;  %v334_v51 = vmul.f32 %v333_v1, %v333_v1  ;;  %v337_v55 = vmul.f32 %v336_v52, %v336_v52  ;;  %v392_v31 = vsub.f32 %v1115_v38, %v1457_v32  ;;  %v352_v36 = vadd.f32 %v351_v60, %v349_v28  ;;  %v1144_v1 = vld [vmem:[#allocation2 + $0xc0] sm:$0xff] }
  0x5f   :  { %v354_v16 = vmul.f32 %v353_v19, %v353_v19  ;;  %v387_v10 = vmul.f32 %v386_v21, %v386_v21  ;;  %v390_v23 = vmul.f32 %v389_v2, %v389_v2  ;;  %v359_v53 = vsub.f32 %v1048_v20, %v1024_v39  ;;  %v1461_v2 = vld [vmem:[#allocation17_spill] sm:$0xff] }
  0x60   :  { %v362_v63 = vsub.f32 %v1058_v54, %v1459_v3  ;;  %v395_v49 = vsub.f32 %v1128_v44, %v1460_v24  ;;  %v313_v52 = vmin.f32 %v1100_v15, %v312_v9  ;;  %v357_v58 = vmul.f32 %v356_v17, %v356_v17 }
  0x61   :  { %v388_v28 = vadd.f32 %v387_v10, %v385_v4  ;;  %v393_v60 = vmul.f32 %v392_v31, %v392_v31  ;;  %v335_v19 = vadd.f32 %v334_v51, %v332_v22  ;;  %v398_v21 = vsub.f32 %v1136_v46, %v900_v34  ;;  %v1464_v51 = vld [vmem:[#allocation20_spill] sm:$0xff] }
  0x62   :  { %v409_v20 = vsub.f32 %v1092_v7, %v1461_v2  ;;  %v411_v54 = vsub.f32 %v1104_v40, %v1462_v0  ;;  %v355_v25 = vadd.f32 %v354_v16, %v352_v36  ;;  %v401_v26 = vsub.f32 %v1144_v1, %v922_v48 }
  0x63   :  { %v391_v11 = vadd.f32 %v390_v23, %v388_v28  ;;  %v414_v15 = vsub.f32 %v1106_v45, %v1463_v27  ;;  %v396_v17 = vmul.f32 %v395_v49, %v395_v49  ;;  %v417_v31 = vsub.f32 %v1115_v38, %v1464_v51  ;;  %v1166_v23 = vld [vmem:[#allocation2 + $0xc8] sm:$0xff] }
  0x64   :  { %v410_v4 = vmul.f32 %v409_v20, %v409_v20  ;;  %v412_v22 = vmul.f32 %v411_v54, %v411_v54  ;;  %v1162_v10 = vmul.f32 %v312_v9, %v988_v8  ;;  %v420_v36 = vsub.f32 %v1128_v44, %v896_v30 }
  0x65   :  { %v394_v2 = vadd.f32 %v393_v60, %v391_v11  ;;  %v415_v34 = vmul.f32 %v414_v15, %v414_v15  ;;  %v360_v16 = vmul.f32 %v359_v53, %v359_v53  ;;  %v418_v0 = vmul.f32 %v417_v31, %v417_v31  ;;  %v1465_v15 = vld [vmem:[#allocation22_spill] sm:$0xff] }
  0x66   :  { %v413_v28 = vadd.f32 %v412_v22, %v410_v4  ;;  %v423_v49 = vsub.f32 %v1136_v46, %v912_v43  ;;  %v338_v20 = vadd.f32 %v337_v55, %v335_v19  ;;  %v358_v54 = vadd.f32 %v357_v58, %v355_v25  ;;  %v1466_v22 = vld [vmem:[#allocation23_spill] sm:$0xff] }
  0x67   :  { %v363_v27 = vmul.f32 %v362_v63, %v362_v63  ;;  %v399_v51 = vmul.f32 %v398_v21, %v398_v21  ;;  %v397_v48 = vadd.f32 %v396_v17, %v394_v2  ;;  %v402_v9 = vmul.f32 %v401_v26, %v401_v26  ;;  %v1467_v63 = vld [vmem:[#allocation26_spill] sm:$0xff] }
  0x68   :  { %v416_v3 = vadd.f32 %v415_v34, %v413_v28  ;;  %v421_v11 = vmul.f32 %v420_v36, %v420_v36  ;;  %v404_v60 = vsub.f32 %v1166_v23, %v940_v18  ;;  %v426_v53 = vsub.f32 %v1144_v1, %v926_v57 }
  0x69   :  { %v435_v4 = vsub.f32 %v1092_v7, %v1465_v15  ;;  %v437_v31 = vsub.f32 %v1104_v40, %v1466_v22  ;;  %v424_v25 = vmul.f32 %v423_v49, %v423_v49  ;;  %v440_v58 = vsub.f32 %v1106_v45, %v1467_v63 }
  0x6a   :  { %v419_v55 = vadd.f32 %v418_v0, %v416_v3  ;;  %v443_v34 = vsub.f32 %v1115_v38, %v947_v35  ;;  %v1182_v26 = vmin.f32 %v313_v52, %v338_v20  ;;  %v446_v2 = vsub.f32 %v1128_v44, %v954_v47 }
  0x6b   :  { %v436_v19 = vmul.f32 %v435_v4, %v435_v4  ;;  %v438_v21 = vmul.f32 %v437_v31, %v437_v31  ;;  %v361_v17 = vadd.f32 %v360_v16, %v358_v54  ;;  %v400_v36 = vadd.f32 %v399_v51, %v397_v48 }
  0x6c   :  { %v422_v28 = vadd.f32 %v421_v11, %v419_v55  ;;  %v441_v15 = vmul.f32 %v440_v58, %v440_v58  ;;  %v405_v22 = vmul.f32 %v404_v60, %v404_v60  ;;  %v444_v3 = vmul.f32 %v443_v34, %v443_v34 }
  0x6d   :  { %v439_v0 = vadd.f32 %v438_v21, %v436_v19  ;;  %v449_v49 = vsub.f32 %v1136_v46, %v960_v61  ;;  %v427_v57 = vmul.f32 %v426_v53, %v426_v53  ;;  %v429_v52 = vsub.f32 %v1166_v23, %v945_v33 }
  0x6e   :  { %v425_v63 = vadd.f32 %v424_v25, %v422_v28  ;;  %v461_v4 = vsub.f32 %v1092_v7, %v964_v6  ;;  %v447_v47 = vmul.f32 %v446_v2, %v446_v2  ;;  %v452_v48 = vsub.f32 %v1144_v1, %v972_v37  ;;  %v1206_v28 = vld [vmem:[#allocation2 + $0xe0] sm:$0xff] }
  0x6f   :  { %v442_v31 = vadd.f32 %v441_v15, %v439_v0  ;;  %v463_v51 = vsub.f32 %v1104_v40, %v966_v29  ;;  %v403_v16 = vadd.f32 %v402_v9, %v400_v36  ;;  %v455_v54 = vsub.f32 %v1166_v23, %v980_v41  ;;  %v1204_v36 = vld [vmem:[#allocation2 + $0xd8] sm:$0xff] }
  0x70   :  { %v462_v11 = vmul.f32 %v461_v4, %v461_v4  ;;  %v466_v60 = vsub.f32 %v1106_v45, %v968_v5  ;;  %v450_v55 = vmul.f32 %v449_v49, %v449_v49  ;;  %v469_v7 = vsub.f32 %v1115_v38, %v978_v50  ;;  %v1208_v45 = vld [vmem:[#allocation2 + $0xe8] sm:$0xff]  ;;  %v1217_v4 = vld [vmem:[#allocation2 + $0xf8] sm:$0xff] }
  0x71   :  { %v445_v53 = vadd.f32 %v444_v3, %v442_v31  ;;  %v464_v25 = vmul.f32 %v463_v51, %v463_v51  ;;  %v428_v15 = vadd.f32 %v427_v57, %v425_v63  ;;  %v430_v58 = vmul.f32 %v429_v52, %v429_v52  ;;  %v1213_v3 = vld [vmem:[#allocation2 + $0xf0] sm:$0xff] }
  0x72   :  { %v467_v34 = vmul.f32 %v466_v60, %v466_v60  ;;  %v472_v40 = vsub.f32 %v1128_v44, %v994_v56  ;;  %v453_v19 = vmul.f32 %v452_v48, %v452_v48  ;;  %v470_v2 = vmul.f32 %v469_v7, %v469_v7 }
  0x73   :  { %v448_v9 = vadd.f32 %v447_v47, %v445_v53  ;;  %v465_v21 = vadd.f32 %v464_v25, %v462_v11  ;;  %v1211_v0 = vmul.f32 %v338_v20, %v988_v8  ;;  %v364_v38 = vadd.f32 %v363_v27, %v361_v17  ;;  %v1245_v25 = vld [vmem:[#allocation2 + $0x108] sm:$0xff] }
  0x74   :  { %v406_v57 = vadd.f32 %v405_v22, %v403_v16  ;;  %v456_v63 = vmul.f32 %v455_v54, %v455_v54  ;;  %v473_v47 = vmul.f32 %v472_v40, %v472_v40  ;;  %v475_v52 = vsub.f32 %v1136_v46, %v1022_v62  ;;  %v1231_v16 = vld [vmem:[#allocation2 + $0x100] sm:$0xff] }
  0x75   :  { %v451_v49 = vadd.f32 %v450_v55, %v448_v9  ;;  %v468_v44 = vadd.f32 %v467_v34, %v465_v21  ;;  %v1219_v31 = vadd.f32 %v430_v58, %v428_v15  ;;  %v503_v48 = vsub.f32 %v1204_v36, %v864_v12  ;;  %v1468_v34 = vld [vmem:[#allocation31_spill] sm:$0xff]  ;;  %v1469_v9 = vld [vmem:[#allocation21_spill] sm:$0xff] }
  0x76   :  { %v505_v27 = vsub.f32 %v1206_v28, %v866_v13  ;;  %v508_v20 = vsub.f32 %v1208_v45, %v868_v14  ;;  %v478_v51 = vsub.f32 %v1144_v1, %v1024_v39  ;;  %v511_v46 = vsub.f32 %v1213_v3, %v1457_v32 }
  0x77   :  { %v454_v22 = vadd.f32 %v453_v19, %v451_v49  ;;  %v471_v17 = vadd.f32 %v470_v2, %v468_v44  ;;  %v504_v54 = vmul.f32 %v503_v48, %v503_v48  ;;  %v514_v12 = vsub.f32 %v1217_v4, %v1460_v24  ;;  %v1470_v49 = vld [vmem:[#allocation17_spill] sm:$0xff]  ;;  %v1256_v44 = vld [vmem:[#allocation2 + $0x110] sm:$0xff]  ;;  %v1472_v48 = vld [vmem:[#allocation18_spill] sm:$0xff] }
  0x78   :  { %v506_v11 = vmul.f32 %v505_v27, %v505_v27  ;;  %v509_v60 = vmul.f32 %v508_v20, %v508_v20  ;;  %v315_v13 = vmin.f32 %v1096_v59, %v1162_v10  ;;  %v341_v14 = vmin.f32 %v1111_v42, %v1211_v0 }
  0x79   :  { %v474_v53 = vadd.f32 %v473_v47, %v471_v17  ;;  %v476_v55 = vmul.f32 %v475_v52, %v475_v52  ;;  %v1240_v1 = vmin.f32 %v1182_v26, %v364_v38  ;;  %v1243_v32 = vmul.f32 %v364_v38, %v988_v8  ;;  %v1471_v47 = vld [vmem:[#allocation24_spill] sm:$0xff] }
  0x7a   :  { %v507_v7 = vadd.f32 %v506_v11, %v504_v54  ;;  %v512_v15 = vmul.f32 %v511_v46, %v511_v46  ;;  %v432_v24 = vmin.f32 %v406_v57, %v1219_v31  ;;  %v479_v58 = vmul.f32 %v478_v51, %v478_v51  ;;  %v1475_v54 = vld [vmem:[#allocation28_spill] sm:$0xff] }
  0x7b   :  { %v481_v40 = vsub.f32 %v1166_v23, %v1468_v34  ;;  %v517_v19 = vsub.f32 %v1231_v16, %v1469_v9  ;;  %v1252_v21 = vadd.f32 %v456_v63, %v454_v22  ;;  %v515_v2 = vmul.f32 %v514_v12, %v514_v12  ;;  %v1473_v23 = vld [vmem:[#allocation19_spill] sm:$0xff]  ;;  %v1474_v22 = vld [vmem:[#allocation20_spill] sm:$0xff] }
  0x7c   :  { %v510_v26 = vadd.f32 %v509_v60, %v507_v7  ;;  %v528_v8 = vsub.f32 %v1204_v36, %v1470_v49  ;;  %v477_v38 = vadd.f32 %v476_v55, %v474_v53  ;;  %v520_v52 = vsub.f32 %v1245_v25, %v1471_v47 }
  0x7d   :  { %v530_v27 = vsub.f32 %v1206_v28, %v1472_v48  ;;  %v533_v20 = vsub.f32 %v1208_v45, %v1473_v23  ;;  %v536_v51 = vsub.f32 %v1213_v3, %v1474_v22  ;;  %v539_v46 = vsub.f32 %v1217_v4, %v896_v30 }
  0x7e   :  { %v513_v17 = vadd.f32 %v512_v15, %v510_v26  ;;  %v529_v63 = vmul.f32 %v528_v8, %v528_v8  ;;  %v1269_v11 = vmul.f32 %v406_v57, %v1475_v54  ;;  %v518_v60 = vmul.f32 %v517_v19, %v517_v19  ;;  %v1476_v57 = vld [vmem:[#allocation25_spill] sm:$0xff] }
  0x7f   :  { %v531_v12 = vmul.f32 %v530_v27, %v530_v27  ;;  %v534_v53 = vmul.f32 %v533_v20, %v533_v20  ;;  %v482_v55 = vmul.f32 %v481_v40, %v481_v40  ;;  %v523_v9 = vsub.f32 %v1256_v44, %v940_v18  ;;  %v1477_v27 = vld [vmem:[#allocation22_spill] sm:$0xff]  ;;  %v1478_v20 = vld [vmem:[#allocation23_spill] sm:$0xff] }
  0x80   :  { %v516_v7 = vadd.f32 %v515_v2, %v513_v17  ;;  %v542_v15 = vsub.f32 %v1231_v16, %v912_v43  ;;  %v458_v26 = vmin.f32 %v432_v24, %v1252_v21  ;;  %v521_v49 = vmul.f32 %v520_v52, %v520_v52  ;;  %v1479_v17 = vld [vmem:[#allocation26_spill] sm:$0xff] }
  0x81   :  { %v532_v8 = vadd.f32 %v531_v12, %v529_v63  ;;  %v537_v47 = vmul.f32 %v536_v51, %v536_v51  ;;  %v480_v30 = vadd.f32 %v479_v58, %v477_v38  ;;  %v540_v48 = vmul.f32 %v539_v46, %v539_v46  ;;  %v1480_v46 = vld [vmem:[#allocation27_spill] sm:$0xff] }
  0x82   :  { %v545_v19 = vsub.f32 %v1245_v25, %v1476_v57  ;;  %v554_v40 = vsub.f32 %v1204_v36, %v1477_v27  ;;  %v519_v2 = vadd.f32 %v518_v60, %v516_v7  ;;  %v556_v18 = vsub.f32 %v1206_v28, %v1478_v20 }
  0x83   :  { %v535_v23 = vadd.f32 %v534_v53, %v532_v8  ;;  %v559_v43 = vsub.f32 %v1208_v45, %v1479_v17  ;;  %v543_v24 = vmul.f32 %v542_v15, %v542_v15  ;;  %v548_v52 = vsub.f32 %v1256_v44, %v945_v33 }
  0x84   :  { %v555_v58 = vmul.f32 %v554_v40, %v554_v40  ;;  %v562_v38 = vsub.f32 %v1213_v3, %v947_v35  ;;  %v557_v22 = vmul.f32 %v556_v18, %v556_v18  ;;  %v565_v60 = vsub.f32 %v1217_v4, %v1480_v46 }
  0x85   :  { %v538_v63 = vadd.f32 %v537_v47, %v535_v23  ;;  %v560_v51 = vmul.f32 %v559_v43, %v559_v43  ;;  %v483_v12 = vadd.f32 %v482_v55, %v480_v30  ;;  %v524_v53 = vmul.f32 %v523_v9, %v523_v9 }
  0x86   :  { %v546_v7 = vmul.f32 %v545_v19, %v545_v19  ;;  %v568_v8 = vsub.f32 %v1231_v16, %v960_v61  ;;  %v522_v15 = vadd.f32 %v521_v49, %v519_v2  ;;  %v558_v27 = vadd.f32 %v557_v22, %v555_v58  ;;  %v1482_v58 = vld [vmem:[#allocation30_spill] sm:$0xff]  ;;  %v1485_v22 = vld [vmem:[#allocation29_spill] sm:$0xff] }
  0x87   :  { %v541_v57 = vadd.f32 %v540_v48, %v538_v63  ;;  %v563_v33 = vmul.f32 %v562_v38, %v562_v38  ;;  %v549_v40 = vmul.f32 %v548_v52, %v548_v52  ;;  %v566_v20 = vmul.f32 %v565_v60, %v565_v60  ;;  %v1481_v52 = vld [vmem:[#allocation32_spill] sm:$0xff]  ;;  %v1483_v38 = vld [vmem:[#allocation34_spill] sm:$0xff] }
  0x88   :  { %v571_v35 = vsub.f32 %v1245_v25, %v972_v37  ;;  %v580_v47 = vsub.f32 %v1204_v36, %v964_v6  ;;  %v561_v18 = vadd.f32 %v560_v51, %v558_v27  ;;  %v574_v55 = vsub.f32 %v1256_v44, %v980_v41 }
  0x89   :  { %v544_v23 = vadd.f32 %v543_v24, %v541_v57  ;;  %v582_v61 = vsub.f32 %v1206_v28, %v966_v29  ;;  %v569_v9 = vmul.f32 %v568_v8, %v568_v8  ;;  %v585_v30 = vsub.f32 %v1208_v45, %v968_v5  ;;  %v1486_v57 = vld [vmem:[#allocation33_spill] sm:$0xff] }
  0x8a   :  { %v581_v49 = vmul.f32 %v580_v47, %v580_v47  ;;  %v588_v48 = vsub.f32 %v1213_v3, %v978_v50  ;;  %v564_v19 = vadd.f32 %v563_v33, %v561_v18  ;;  %v591_v6 = vsub.f32 %v1217_v4, %v994_v56 }
  0x8b   :  { %v547_v37 = vadd.f32 %v546_v7, %v544_v23  ;;  %v583_v2 = vmul.f32 %v582_v61, %v582_v61  ;;  %v433_v41 = vmul.f32 %v1219_v31, %v1475_v54  ;;  %v1308_v36 = vmin.f32 %v458_v26, %v483_v12 }
  0x8c   :  { %v586_v29 = vmul.f32 %v585_v30, %v585_v30  ;;  %v594_v28 = vsub.f32 %v1231_v16, %v1022_v62  ;;  %v567_v17 = vadd.f32 %v566_v20, %v564_v19  ;;  %v572_v5 = vmul.f32 %v571_v35, %v571_v35 }
  0x8d   :  { %v584_v45 = vadd.f32 %v583_v2, %v581_v49  ;;  %v589_v43 = vmul.f32 %v588_v48, %v588_v48  ;;  %v525_v50 = vadd.f32 %v524_v53, %v522_v15  ;;  %v575_v3 = vmul.f32 %v574_v55, %v574_v55 }
  0x8e   :  { %v597_v24 = vsub.f32 %v1245_v25, %v1024_v39  ;;  %714 = vrsqrt.f32 %v1481_v52  ;;  %v550_v56 = vadd.f32 %v549_v40, %v547_v37  ;;  %v570_v4 = vadd.f32 %v569_v9, %v567_v17  ;;  %v1488_v17 = vld [vmem:[#allocation12_spill] sm:$0xff] }
  0x8f   :  { %v587_v31 = vadd.f32 %v586_v29, %v584_v45  ;;  %v592_v26 = vmul.f32 %v591_v6, %v591_v6  ;;  %v1484_v63 = vmin.f32 %v1482_v58, %v1483_v38  ;;  %v459_v16 = vmul.f32 %v1252_v21, %v1475_v54  ;;  %v1487_v29 = vld [vmem:[#allocation11_spill] sm:$0xff] }
  0x90   :  { %v526_v51 = vmul.f32 %v525_v50, %v1485_v22  ;;  %v595_v46 = vmul.f32 %v594_v28, %v594_v28  ;;  %v573_v60 = vadd.f32 %v572_v5, %v570_v4  ;;  %v600_v39 = vsub.f32 %v1256_v44, %v1468_v34 }
  0x91   :  { %v408_v62 = vmin.f32 %v1484_v63, %v1269_v11  ;;  %v590_v53 = vadd.f32 %v589_v43, %v587_v31  ;;  %716 = vrsqrt.f32 %v1240_v1  ;;  %v434_v25 = vmin.f32 %v315_v13, %v433_v41 }
  0x92   :  { %v598_v7 = vmul.f32 %v597_v24, %v597_v24  ;;  %718 = vrsqrt.f32 %v1308_v36  ;;  %v551_v11 = vmin.f32 %v525_v50, %v550_v56  ;;  %v552_v21 = vmul.f32 %v550_v56, %v1485_v22 }
  0x93   :  { %v576_v8 = vadd.f32 %v575_v3, %v573_v60  ;;  %v593_v15 = vadd.f32 %v592_v26, %v590_v53  ;;  %v367_v27 = vmin.f32 %v1486_v57, %v1243_v32  ;;  %v460_v34 = vmin.f32 %v341_v14, %v459_v16 }
  0x94   :  { %v485_v44 = vmul.f32 %v483_v12, %v1475_v54  ;;  %v1336_v33 = vmin.f32 %v408_v62, %v526_v51  ;;  %v601_v13 = vmul.f32 %v600_v39, %v600_v39  ;;  %v1339_v40 = vmin.f32 %v434_v25, %v552_v21  ;;  %v1490_v39 = vld [vmem:[#allocation14_spill] sm:$0xff] }
  0x95   :  { %v578_v59 = vmul.f32 %v576_v8, %v1485_v22  ;;  %v596_v10 = vadd.f32 %v595_v46, %v593_v15  ;;  %v577_v20 = vmin.f32 %v551_v11, %v576_v8  ;;  %vm608_vm0 = vcmp.eq.f32.partialorder %v1481_v52, inf }
  0x96   :  { %v486_v23 = vmin.f32 %v367_v27, %v485_v44  ;;  %720 = vrsqrt.f32 %v1336_v33  ;;  %vm610_vm1 = vcmp.eq.f32.partialorder %v1481_v52, 0.0  ;;  %v611_v0 = vand.u32 2147483648, %v1481_v52 }
  0x97   :  { %v599_v35 = vadd.f32 %v598_v7, %v596_v10  ;;  %v1341_v18 = vmin.f32 %v460_v34, %v578_v59  ;;  %vm616_vm2 = vcmp.eq.f32.partialorder %v1240_v1, inf  ;;  %v619_v55 = vand.u32 2147483648, %v1240_v1 }
  0x98   :  { %v715_v47 = vpop.eup %714  ;;  %722 = vrsqrt.f32 %v1339_v40  ;;  %vm618_vm3 = vcmp.eq.f32.partialorder %v1240_v1, 0.0  ;;  %vm625_vm4 = vcmp.eq.f32.partialorder %v1308_v36, inf  ;;  %v628_v6 = vand.u32 2147483648, %v1308_v36 }
  0x99   :  { %v602_v32 = vadd.f32 %v601_v13, %v599_v35  ;;  %v607_v42 = vmul.f32 %v715_v47, %v1481_v52  ;;  %724 = vrsqrt.f32 %v1341_v18  ;;  %vm627_vm5 = vcmp.eq.f32.partialorder %v1308_v36, 0.0 }
  0x9a   :  { %v674_v3 = vlaneseq  ;;  %vm643_vm7 = vcmp.eq.f32.partialorder %v1336_v33, inf  ;;  %vm645_vm9 = vcmp.eq.f32.partialorder %v1336_v33, 0.0  ;;  %v646_v63 = vand.u32 2147483648, %v1336_v33 }
  0x9b   :  { %v717_v14 = vpop.eup %716  ;;  %v603_v54 = vmin.f32 %v577_v20, %v602_v32  ;;  %v604_v12 = vmul.f32 %v602_v32, %v1485_v22  ;;  %v609_v9 = vsel %vm608_vm0, %v1481_v52, %v607_v42  ;;  %v1489_v52 = vld [vmem:[#allocation13_spill] sm:$0xff]  ;;  %vm651_vm10 = vcmp.eq.f32.partialorder %v1339_v40, inf }
  0x9c   :  { %v719_v61 = vpop.eup %718  ;;  %v615_v49 = vmul.f32 %v717_v14, %v1240_v1  ;;  %v612_v19 = vsel %vm610_vm1, %v611_v0, %v609_v9  ;;  %v675_v62 = vshrl.u32 %v674_v3, 7  ;;  %vm653_vm11 = vcmp.eq.f32.partialorder %v1339_v40, 0.0 }
  0x9d   :  { %v605_v30 = vmin.f32 %v486_v23, %v604_v12  ;;  %v624_v48 = vmul.f32 %v719_v61, %v1308_v36  ;;  %726 = vrsqrt.f32 %v603_v54  ;;  %v613_v28 = vmul.f32 %v612_v19, %v1487_v29 }
  0x9e   :  { %v617_v37 = vsel %vm616_vm2, %v1240_v1, %v615_v49  ;;  %vm634_vm6 = vcmp.eq.f32.partialorder %v603_v54, inf  ;;  %v637_v26 = vand.u32 2147483648, %v603_v54  ;;  %vm636_vm8 = vcmp.eq.f32.partialorder %v603_v54, 0.0 }
  0x9f   :  { %v620_v2 = vsel %vm618_vm3, %v619_v55, %v617_v37  ;;  %728 = vrsqrt.f32 %v605_v30  ;;  %v626_v41 = vsel %vm625_vm4, %v1308_v36, %v624_v48  ;;  %v654_v53 = vand.u32 2147483648, %v1339_v40 }
  0xa0   :  { %v621_v5 = vmul.f32 %v620_v2, %v1488_v17  ;;  %v721_v45 = vpop.eup %720  ;;  %v629_v43 = vsel %vm627_vm5, %v628_v6, %v626_v41  ;;  %vm659_vm12 = vcmp.eq.f32.partialorder %v1341_v18, inf  ;;  %v662_v11 = vand.u32 2147483648, %v1341_v18 }
  0xa1   :  { %v630_v56 = vmul.f32 %v629_v43, %v1489_v52  ;;  %v642_v4 = vmul.f32 %v721_v45, %v1336_v33  ;;  %vm667_vm13 = vcmp.eq.f32.partialorder %v605_v30, inf  ;;  %v676_v15 = vmul.u32 128, %v675_v62 }
  0xa2   :  { %v723_v50 = vpop.eup %722  ;;  %v622_v24 = vadd.f32 %v621_v5, %v613_v28  ;;  %v680_v57 = vand.u32 127, %v674_v3  ;;  %vm661_vm14 = vcmp.eq.f32.partialorder %v1341_v18, 0.0  ;;  %v670_v59 = vand.u32 2147483648, %v605_v30 }
  0xa3   :  { %v725_v1 = vpop.eup %724  ;;  %v650_v58 = vmul.f32 %v723_v50, %v1339_v40  ;;  %v644_v51 = vsel %vm643_vm7, %v1336_v33, %v642_v4  ;;  %vm669_vm15 = vcmp.eq.f32.partialorder %v605_v30, 0.0 }
  0xa4   :  { %v631_v16 = vadd.f32 %v630_v56, %v622_v24  ;;  %v658_v46 = vmul.f32 %v725_v1, %v1341_v18  ;;  %v647_v8 = vsel %vm645_vm9, %v646_v63, %v644_v51  ;;  %v681_v20 = vadd.s32 %v680_v57, %v676_v15 }
  0xa5   :  { %v652_v7 = vsel %vm651_vm10, %v1339_v40, %v650_v58 }
  0xa6   :  { %v660_v34 = vsel %vm659_vm12, %v1341_v18, %v658_v46  ;;  %v655_v44 = vsel %vm653_vm11, %v654_v53, %v652_v7  ;;  %vm682_vm0 = vcmp.lt.s32.totalorder %v681_v20, 16 }
  0xa7   :  { %v727_v31 = vpop.eup %726  ;;  %v663_v40 = vsel %vm661_vm14, %v662_v11, %v660_v34 }
  0xa8   :  { %v633_v36 = vmul.f32 %v727_v31, %v603_v54 }
  0xa9   :  { %v729_v38 = vpop.eup %728 }
  0xaa   :  { %v635_v22 = vsel %vm634_vm6, %v603_v54, %v633_v36  ;;  %v666_v21 = vmul.f32 %v729_v38, %v605_v30 }
  0xab   :  { %v638_v60 = vsel %vm636_vm8, %v637_v26, %v635_v22 }
  0xac   :  { %v639_v25 = vmul.f32 %v638_v60, %v1490_v39  ;;  %v668_v13 = vsel %vm667_vm13, %v605_v30, %v666_v21 }
  0xad   :  { %v671_v47 = vsel %vm669_vm15, %v670_v59, %v668_v13 }
  0xae   :  { %v640_v27 = vadd.f32 %v639_v25, %v631_v16 }
  0xb0   :  { %v648_v10 = vadd.f32 %v647_v8, %v640_v27 }
  0xb2   :  { %v656_v35 = vadd.f32 %v655_v44, %v648_v10 }
  0xb4   :  { %v664_v23 = vadd.f32 %v663_v40, %v656_v35 }
  0xb6   :  { %v672_v33 = vadd.f32 %v671_v47, %v664_v23 }
  0xb8   :  { %v683_v32 = vsel %vm682_vm0, %v672_v33, 0.0 }
  0xb9   :  { %684 = vst [vmem:[#allocation7] sm:$0xff] %v683_v32 }
  0xba   :  { %785 = shalt.err (!%p782_p6)
}
  0xbb   :  { %s786_s10 = scalar_lea.hbm %s1399_s2, 128 }
  0xbc   :  { %p787_p7 = scmp.ne.s32.totalorder %s1399_s2, %s786_s10  ;;  %p790_p8 = scmp.lt.u32.totalorder %s786_s10, %s1399_s2 }
  0xbe   :  { %p792_p9 = pnand %p790_p8, %p787_p7 }
  0xc0   :  { %795 = shalt.err (!%p792_p9)
}
  0xc1   :  { %694 = dma.vmem_to_hbm [thread:$0]  %s692_s6, 128, %s1399_s2, [#allocation4]  }
  0xc2   :  { %800 = dma.done.wait [#allocation4], 128  }
  0xc3   :  { %801 = vsyncadd [#allocation4], 4294967168 }
  0xc4   :  { %698 = vsyncpa [#allocation3], 1 }
  0xc5   :  { %699 = vsyncpa [#allocation6], 1 }
  0xc6   :  { %700 = vsyncpa [#allocation4], 1 }

</bundles_post_ra>
